<compile_context>
chip_gen: v7x
topology: tpu7x:2x2x1
jax: 0.10.0
libtpu: 0.0.40
codegen_flags: <defaults>
</compile_context>

<pallas_src>
import functools

import numpy as np
import jax
import jax.numpy as jnp
from jax.experimental import pallas as pl
from jax.experimental.pallas import tpu as pltpu

EXPANDED = 280  # the module always interpolates to (280, 280)


# ---------------------------------------------------------------------------
# glue: 1-D linear interpolation matrix (align_corners=True semantics)
# ---------------------------------------------------------------------------
def _interp_matrix(n_out: int, n_in: int) -> np.ndarray:
    W = np.zeros((n_out, n_in), dtype=np.float32)
    if n_out == 1:
        src = np.zeros((1,), dtype=np.float64)
    else:
        src = np.arange(n_out, dtype=np.float64) * (n_in - 1) / (n_out - 1)
    s0 = np.clip(np.floor(src).astype(np.int64), 0, n_in - 1)
    s1 = np.clip(s0 + 1, 0, n_in - 1)
    frac = (src - s0).astype(np.float32)
    rows = np.arange(n_out)
    np.add.at(W, (rows, s0), 1.0 - frac)
    np.add.at(W, (rows, s1), frac)
    return W


def _pick_batch_tile(batch: int, max_tile: int = 8) -> int:
    """Largest divisor of `batch` <= max_tile, preferring a grid of >= 2 steps
    (so the parallel grid axis can be split across both v7x TensorCores)."""
    divisors = [d for d in range(1, min(batch, max_tile) + 1) if batch % d == 0]
    bt = max(divisors)
    if batch >= 2 and batch // bt < 2:
        two_plus = [d for d in divisors if batch // d >= 2]
        if two_plus:
            bt = max(two_plus)
    return bt


# ---------------------------------------------------------------------------
# fused kernel: channel-reduce -> upsample -> ReLU head -> normalize -> downsample
# ---------------------------------------------------------------------------
def _fused_kernel(w_ref, b_ref, wxT_up_ref, wy_up_ref, wy_dn_ref, wx_dn_ref,
                  x_ref, o_ref, *, C, H, Bt, dot_dtype):
    # x_ref block: (C, Bt*H, W) -- Bt images' rows stacked, channel-major.

    # TODO(synk): the real DepthAnythingV2 (DINOv2 ViT-S encoder + DPT head loaded
    # from a .pth checkpoint) is replaced by this deterministic 1x1-conv(+bias)+ReLU
    # depth predictor; everything else follows the module's forward exactly.
    # 1x1-conv channel reduction (+bias) applied BEFORE the resizes: conv, bias and
    # bilinear interp are all linear (interp rows sum to 1), so this is exact and
    # shrinks the first matmul from (C*Bt*H, W) to (Bt*H, W).
    s = x_ref[0] * w_ref[0]
    for c in range(1, C):
        s = s + x_ref[c] * w_ref[c]
    s = s + b_ref[0]                                                  # (Bt*H, W)

    # 1) width-axis bilinear upsample for ALL Bt images in one MXU matmul.
    t = jnp.dot(s.astype(dot_dtype), wxT_up_ref[...],
                preferred_element_type=jnp.float32)                   # (Bt*H, 280)

    wy_up = wy_up_ref[...]                                            # (280, H)
    wy_dn = wy_dn_ref[...]                                            # (H, 280)
    wx_dn = wx_dn_ref[...]                                            # (W, 280)

    # Per-image tail (the normalization is per image). Bt is small and static,
    # so the loop is unrolled for LLO scheduling visibility.
    for i in range(Bt):
        s_i = t[i * H:(i + 1) * H, :]                                 # (H, 280)

        # 2) height-axis upsample + ReLU (synthetic depth head).
        disp = jnp.dot(wy_up, s_i.astype(dot_dtype),
                       preferred_element_type=jnp.float32)            # (280, 280)
        disp = jnp.maximum(disp, 0.0)

        # 3) per-image zero-masked min/max normalization, single fused pass.
        zero = disp == 0.0
        minv = jnp.min(jnp.where(zero, jnp.inf, disp))                # min over non-zero
        maxv = jnp.max(disp)            # disp >= 0 post-ReLU -> equals the masked max
        den = maxv - minv
        inv_den = jnp.where(den > 0.0, 1.0 / den, 0.0)                # max==min / all-masked guard
        norm = jnp.where(zero, 1.0, (maxv - disp) * inv_den)          # (280, 280)

        # 4) bilinear downsample back to (H, W): two MXU matmuls with K = 280,
        #    lane-dense (.., 280) weight constants.
        t2 = jnp.dot(wy_dn, norm.astype(dot_dtype),
                     preferred_element_type=jnp.float32)              # (H, 280)
        shrunk = jax.lax.dot_general(t2.astype(dot_dtype), wx_dn,
                                     (((1,), (1,)), ((), ())),
                                     preferred_element_type=jnp.float32)  # (H, W)
        o_ref[i] = shrunk


# ---------------------------------------------------------------------------
# full forward
# ---------------------------------------------------------------------------
def depth_anything_forward(x: jnp.ndarray, w: jnp.ndarray, b: jnp.ndarray,
                           *, max_batch_tile: int = 8,
                           dot_dtype=jnp.float32) -> jnp.ndarray:
    """x: (B, C, H, W) float32 NCHW -> (B, 1, H, W) float32.

    dot_dtype=jnp.bfloat16 switches MXU operands to bf16 (f32 accumulation) for
    native-rate matmuls on v6e/v7x; default f32 matches the PyTorch reference.
    """
    B, C, H, W = x.shape

    Bt = _pick_batch_tile(B, max_batch_tile)
    if (Bt * H) % 8 != 0 and Bt != B:
        Bt = B  # keep the second-minor block dim sublane-aligned (or full-extent)
    grid = (B // Bt,)

    # interpolation weight constants (align_corners=True), wide (280) axis last
    # wherever the matmul form allows lane-dense loads.
    wxT_up = jnp.asarray(_interp_matrix(EXPANDED, W).T, dtype=dot_dtype)  # (W, 280)
    wy_up = jnp.asarray(_interp_matrix(EXPANDED, H), dtype=dot_dtype)     # (280, H)
    wy_dn = jnp.asarray(_interp_matrix(H, EXPANDED), dtype=dot_dtype)     # (H, 280)
    wx_dn = jnp.asarray(_interp_matrix(W, EXPANDED), dtype=dot_dtype)     # (W, 280)

    # (B, C, H, W) -> (C, B*H, W): each grid step grabs Bt images' rows per channel,
    # so the channel reduce + batched width-resize need no in-kernel reshape.
    x_rows = jnp.transpose(x, (1, 0, 2, 3)).reshape(C, B * H, W)

    kernel = functools.partial(_fused_kernel, C=C, H=H, Bt=Bt, dot_dtype=dot_dtype)
    out = pl.pallas_call(
        kernel,
        out_shape=jax.ShapeDtypeStruct((B, H, W), jnp.float32),
        grid=grid,
        in_specs=[
            pl.BlockSpec(memory_space=pltpu.MemorySpace.SMEM),            # w (C,)
            pl.BlockSpec(memory_space=pltpu.MemorySpace.SMEM),            # b (1,)
            pl.BlockSpec((W, EXPANDED), lambda i: (0, 0)),                # wxT_up (const)
            pl.BlockSpec((EXPANDED, H), lambda i: (0, 0)),                # wy_up  (const)
            pl.BlockSpec((H, EXPANDED), lambda i: (0, 0)),                # wy_dn  (const)
            pl.BlockSpec((W, EXPANDED), lambda i: (0, 0)),                # wx_dn  (const)
            pl.BlockSpec((C, Bt * H, W), lambda i: (0, i, 0)),            # x rows
        ],
        out_specs=pl.BlockSpec((Bt, H, W), lambda i: (i, 0, 0)),
        compiler_params=pltpu.CompilerParams(dimension_semantics=("parallel",)),
    )(w, b, wxT_up, wy_up, wy_dn, wx_dn, x_rows)

    return out.reshape(B, 1, H, W)


# ---------------------------------------------------------------------------
# pure-JAX reference (same synthetic head / same guard semantics)
# ---------------------------------------------------------------------------
def _reference_forward(x, w, b):
    B, C, H, W = x.shape
    wxT_up = jnp.asarray(_interp_matrix(EXPANDED, W).T)
    wy_up = jnp.asarray(_interp_matrix(EXPANDED, H))
    wy_dn = jnp.asarray(_interp_matrix(H, EXPANDED))
    wx_dn = jnp.asarray(_interp_matrix(W, EXPANDED))
    s = jnp.einsum('bchw,c->bhw', x, w) + b[0]
    t = jnp.einsum('bhw,we->bhe', s, wxT_up)
    disp = jnp.maximum(jnp.einsum('eh,bhf->bef', wy_up, t), 0.0)
    zero = disp == 0.0
    minv = jnp.min(jnp.where(zero, jnp.inf, disp), axis=(1, 2), keepdims=True)
    maxv = jnp.max(disp, axis=(1, 2), keepdims=True)
    den = maxv - minv
    inv_den = jnp.where(den > 0.0, 1.0 / den, 0.0)
    norm = jnp.where(zero, 1.0, (maxv - disp) * inv_den)
    t2 = jnp.einsum('he,bef->bhf', wy_dn, norm)
    out = jnp.einsum('bhf,wf->bhw', t2, wx_dn)
    return out.reshape(B, 1, H, W)


if __name__ == "__main__":
    key = jax.random.PRNGKey(0)
    kx, kw = jax.random.split(key, 2)

    B, C, H, W = 2, 3, 16, 16                 # RGB input, small spatial size
    x = jax.random.normal(kx, (B, C, H, W), dtype=jnp.float32)

    # deterministic synthetic "backbone" parameters
    w = jax.random.normal(kw, (C,), dtype=jnp.float32)
    b = jnp.zeros((1,), dtype=jnp.float32)

    out = jax.block_until_ready(depth_anything_forward(x, w, b))
    assert out.shape == (B, 1, H, W), out.shape
    assert bool(jnp.all(jnp.isfinite(out)))

    # Correctness vs. pure-JAX reference.  A tiny fraction of pixels may differ
    # because the zero-mask is an exact fp equality at the ReLU boundary; all
    # other pixels must agree closely.
    ref = _reference_forward(x, w, b)
    frac_bad = float(jnp.mean((jnp.abs(out - ref) > 1e-2).astype(jnp.float32)))
    assert frac_bad < 0.02, frac_bad

    print("KERNEL_OK")
</pallas_src>

<mosaic_0001>
module attributes {stable_mosaic.version = 11 : i64} {
  func.func @_fused_kernel(%arg0: i32, %arg1: memref<3xf32, #tpu.memory_space<smem>>, %arg2: memref<1xf32, #tpu.memory_space<smem>>, %arg3: memref<16x280xf32, #tpu.memory_space<vmem>>, %arg4: memref<280x16xf32, #tpu.memory_space<vmem>>, %arg5: memref<16x280xf32, #tpu.memory_space<vmem>>, %arg6: memref<16x280xf32, #tpu.memory_space<vmem>>, %arg7: memref<3x16x16xf32, #tpu.memory_space<vmem>>, %arg8: memref<1x16x16xf32, #tpu.memory_space<vmem>>) attributes {dimension_semantics = [#tpu.dimension_semantics<parallel>], iteration_bounds = array<i64: 2>, scalar_prefetch = 0 : i64, scratch_operands = 0 : i64, tpu.core_type = #tpu.core_type<tc>, window_params = [{transform_indices = @transform_0, window_bounds = array<i64: 3>}, {transform_indices = @transform_1, window_bounds = array<i64: 1>}, {pipeline_mode = #tpu.pipeline_mode<synchronous>, transform_indices = @transform_2, window_bounds = array<i64: 16, 280>}, {pipeline_mode = #tpu.pipeline_mode<synchronous>, transform_indices = @transform_3, window_bounds = array<i64: 280, 16>}, {pipeline_mode = #tpu.pipeline_mode<synchronous>, transform_indices = @transform_4, window_bounds = array<i64: 16, 280>}, {pipeline_mode = #tpu.pipeline_mode<synchronous>, transform_indices = @transform_5, window_bounds = array<i64: 16, 280>}, {transform_indices = @transform_6, window_bounds = array<i64: 3, 16, 16>}, {transform_indices = @transform_7, window_bounds = array<i64: 1, 16, 16>}]} {
    %c0 = arith.constant 0 : index
    %c0_0 = arith.constant 0 : index
    %c0_1 = arith.constant 0 : index
    %0 = vector.load %arg7[%c0, %c0_0, %c0_1] : memref<3x16x16xf32, #tpu.memory_space<vmem>>, vector<1x16x16xf32>
    %1 = vector.shape_cast %0 : vector<1x16x16xf32> to vector<16x16xf32>
    %c0_2 = arith.constant 0 : index
    %2 = memref.load %arg1[%c0_2] : memref<3xf32, #tpu.memory_space<smem>>
    %3 = vector.broadcast %2 : f32 to vector<16x16xf32>
    %4 = arith.mulf %1, %3 : vector<16x16xf32>
    %c1 = arith.constant 1 : index
    %c0_3 = arith.constant 0 : index
    %c0_4 = arith.constant 0 : index
    %5 = vector.load %arg7[%c1, %c0_3, %c0_4] : memref<3x16x16xf32, #tpu.memory_space<vmem>>, vector<1x16x16xf32>
    %6 = vector.shape_cast %5 : vector<1x16x16xf32> to vector<16x16xf32>
    %c1_5 = arith.constant 1 : index
    %7 = memref.load %arg1[%c1_5] : memref<3xf32, #tpu.memory_space<smem>>
    %8 = vector.broadcast %7 : f32 to vector<16x16xf32>
    %9 = arith.mulf %6, %8 : vector<16x16xf32>
    %10 = arith.addf %4, %9 : vector<16x16xf32>
    %c2 = arith.constant 2 : index
    %c0_6 = arith.constant 0 : index
    %c0_7 = arith.constant 0 : index
    %11 = vector.load %arg7[%c2, %c0_6, %c0_7] : memref<3x16x16xf32, #tpu.memory_space<vmem>>, vector<1x16x16xf32>
    %12 = vector.shape_cast %11 : vector<1x16x16xf32> to vector<16x16xf32>
    %c2_8 = arith.constant 2 : index
    %13 = memref.load %arg1[%c2_8] : memref<3xf32, #tpu.memory_space<smem>>
    %14 = vector.broadcast %13 : f32 to vector<16x16xf32>
    %15 = arith.mulf %12, %14 : vector<16x16xf32>
    %16 = arith.addf %10, %15 : vector<16x16xf32>
    %c0_9 = arith.constant 0 : index
    %17 = memref.load %arg2[%c0_9] : memref<1xf32, #tpu.memory_space<smem>>
    %18 = vector.broadcast %17 : f32 to vector<16x16xf32>
    %19 = arith.addf %16, %18 : vector<16x16xf32>
    %c0_10 = arith.constant 0 : index
    %c0_11 = arith.constant 0 : index
    %20 = vector.load %arg3[%c0_10, %c0_11] : memref<16x280xf32, #tpu.memory_space<vmem>>, vector<16x280xf32>
    %cst = arith.constant dense<0.000000e+00> : vector<16x280xf32>
    %21 = tpu.matmul %19, %20, %cst {dimension_numbers = #tpu.dot_dimension_numbers<[1], [0], [0], [1], [0, 0, 1, 1], [], []>} : vector<16x16xf32>, vector<16x280xf32>, vector<16x280xf32> -> vector<16x280xf32>
    %c0_12 = arith.constant 0 : index
    %c0_13 = arith.constant 0 : index
    %22 = vector.load %arg4[%c0_12, %c0_13] : memref<280x16xf32, #tpu.memory_space<vmem>>, vector<280x16xf32>
    %c0_14 = arith.constant 0 : index
    %c0_15 = arith.constant 0 : index
    %23 = vector.load %arg5[%c0_14, %c0_15] : memref<16x280xf32, #tpu.memory_space<vmem>>, vector<16x280xf32>
    %c0_16 = arith.constant 0 : index
    %c0_17 = arith.constant 0 : index
    %24 = vector.load %arg6[%c0_16, %c0_17] : memref<16x280xf32, #tpu.memory_space<vmem>>, vector<16x280xf32>
    %cst_18 = arith.constant dense<0.000000e+00> : vector<280x280xf32>
    %25 = tpu.matmul %22, %21, %cst_18 {dimension_numbers = #tpu.dot_dimension_numbers<[1], [0], [0], [1], [0, 0, 1, 1], [], []>} : vector<280x16xf32>, vector<16x280xf32>, vector<280x280xf32> -> vector<280x280xf32>
    %cst_19 = arith.constant 0.000000e+00 : f32
    %26 = vector.broadcast %cst_19 : f32 to vector<280x280xf32>
    %27 = arith.maximumf %25, %26 : vector<280x280xf32>
    %cst_20 = arith.constant 0.000000e+00 : f32
    %28 = vector.broadcast %cst_20 : f32 to vector<280x280xf32>
    %29 = arith.cmpf oeq, %27, %28 : vector<280x280xf32>
    %cst_21 = arith.constant 0x7F800000 : f32
    %30 = vector.broadcast %cst_21 : f32 to vector<280x280xf32>
    %31 = arith.select %29, %30, %27 : vector<280x280xi1>, vector<280x280xf32>
    %32 = vector.shape_cast %31 : vector<280x280xf32> to vector<1x280x280xf32>
    %cst_22 = arith.constant dense<0x7F800000> : vector<1xf32>
    %33 = vector.multi_reduction <minimumf>, %32, %cst_22 [1, 2] : vector<1x280x280xf32> to vector<1xf32>
    %34 = vector.shape_cast %33 : vector<1xf32> to vector<1x1x1xf32>
    %35 = vector.extract %34[0, 0, 0] : f32 from vector<1x1x1xf32>
    %36 = vector.shape_cast %27 : vector<280x280xf32> to vector<1x280x280xf32>
    %cst_23 = arith.constant dense<0xFF800000> : vector<1xf32>
    %37 = vector.multi_reduction <maximumf>, %36, %cst_23 [1, 2] : vector<1x280x280xf32> to vector<1xf32>
    %38 = vector.shape_cast %37 : vector<1xf32> to vector<1x1x1xf32>
    %39 = vector.extract %38[0, 0, 0] : f32 from vector<1x1x1xf32>
    %40 = arith.subf %39, %35 : f32
    %cst_24 = arith.constant 0.000000e+00 : f32
    %41 = arith.cmpf ogt, %40, %cst_24 : f32
    %cst_25 = arith.constant 1.000000e+00 : f32
    %42 = arith.divf %cst_25, %40 : f32
    %cst_26 = arith.constant 0.000000e+00 : f32
    %43 = arith.select %41, %42, %cst_26 : f32
    %44 = vector.broadcast %39 : f32 to vector<280x280xf32>
    %45 = arith.subf %44, %27 : vector<280x280xf32>
    %46 = vector.broadcast %43 : f32 to vector<280x280xf32>
    %47 = arith.mulf %45, %46 : vector<280x280xf32>
    %cst_27 = arith.constant 1.000000e+00 : f32
    %48 = vector.broadcast %cst_27 : f32 to vector<280x280xf32>
    %49 = arith.select %29, %48, %47 : vector<280x280xi1>, vector<280x280xf32>
    %cst_28 = arith.constant dense<0.000000e+00> : vector<16x280xf32>
    %50 = tpu.matmul %23, %49, %cst_28 {dimension_numbers = #tpu.dot_dimension_numbers<[1], [0], [0], [1], [0, 0, 1, 1], [], []>} : vector<16x280xf32>, vector<280x280xf32>, vector<16x280xf32> -> vector<16x280xf32>
    %cst_29 = arith.constant dense<0.000000e+00> : vector<16x16xf32>
    %51 = tpu.matmul %50, %24, %cst_29 {dimension_numbers = #tpu.dot_dimension_numbers<[1], [1], [0], [0], [0, 0, 1, 0], [], []>} : vector<16x280xf32>, vector<16x280xf32>, vector<16x16xf32> -> vector<16x16xf32>
    %c0_30 = arith.constant 0 : index
    %c0_31 = arith.constant 0 : index
    %c0_32 = arith.constant 0 : index
    %52 = vector.load %arg8[%c0_30, %c0_31, %c0_32] : memref<1x16x16xf32, #tpu.memory_space<vmem>>, vector<1x16x16xf32>
    %53 = vector.shape_cast %52 : vector<1x16x16xf32> to vector<16x16xf32>
    %54 = vector.shape_cast %51 : vector<16x16xf32> to vector<1x16x16xf32>
    tpu.vector_store %arg8[%c0_30, %c0_31, %c0_32], %54 {strides = array<i32>} : memref<1x16x16xf32, #tpu.memory_space<vmem>>, vector<1x16x16xf32>,
    return
  }
  func.func @transform_0(%arg0: i32) -> i32 {
    %c0_i32 = arith.constant 0 : i32
    %c0_i32_0 = arith.constant 0 : i32
    return %c0_i32 : i32
  }
  func.func @transform_1(%arg0: i32) -> i32 {
    %c0_i32 = arith.constant 0 : i32
    %c0_i32_0 = arith.constant 0 : i32
    return %c0_i32 : i32
  }
  func.func @transform_2(%arg0: i32) -> (i32, i32) {
    %c0_i32 = arith.constant 0 : i32
    %c0_i32_0 = arith.constant 0 : i32
    %c0_i32_1 = arith.constant 0 : i32
    return %c0_i32, %c0_i32_0 : i32, i32
  }
  func.func @transform_3(%arg0: i32) -> (i32, i32) {
    %c0_i32 = arith.constant 0 : i32
    %c0_i32_0 = arith.constant 0 : i32
    %c0_i32_1 = arith.constant 0 : i32
    return %c0_i32, %c0_i32_0 : i32, i32
  }
  func.func @transform_4(%arg0: i32) -> (i32, i32) {
    %c0_i32 = arith.constant 0 : i32
    %c0_i32_0 = arith.constant 0 : i32
    %c0_i32_1 = arith.constant 0 : i32
    return %c0_i32, %c0_i32_0 : i32, i32
  }
  func.func @transform_5(%arg0: i32) -> (i32, i32) {
    %c0_i32 = arith.constant 0 : i32
    %c0_i32_0 = arith.constant 0 : i32
    %c0_i32_1 = arith.constant 0 : i32
    return %c0_i32, %c0_i32_0 : i32, i32
  }
  func.func @transform_6(%arg0: i32) -> (i32, i32, i32) {
    %c0_i32 = arith.constant 0 : i32
    %c0_i32_0 = arith.constant 0 : i32
    %c0_i32_1 = arith.constant 0 : i32
    return %c0_i32, %arg0, %c0_i32_0 : i32, i32, i32
  }
  func.func @transform_7(%arg0: i32) -> (i32, i32, i32) {
    %c0_i32 = arith.constant 0 : i32
    %c0_i32_0 = arith.constant 0 : i32
    %c0_i32_1 = arith.constant 0 : i32
    return %arg0, %c0_i32, %c0_i32_0 : i32, i32, i32
  }
}

</mosaic_0001>

<bundles_post_ra>
// kernel: tpu_custom_call.1
= control target key start
LH: loop header
LB: loop body
LE: loop exit
PB: predicated region body
PF: predicated region fallthrough
CT: control target
= control target key end

     0   :  { %s5677_s0 = inlined_call_operand.vmem [shape: f32[3], index: 0, kind: input, shape index: {}]   ;;  %s5678_s1 = inlined_call_operand.<no memory space> [shape: f32[1], index: 1, kind: input, shape index: {}]   ;;  %s5679_s2 = inlined_call_operand.vmem [shape: f32[16,280], index: 2, kind: input, shape index: {}]   ;;  %s5680_s3 = inlined_call_operand.vmem [shape: f32[280,16], index: 3, kind: input, shape index: {}]   ;;  %s5681_s4 = inlined_call_operand.vmem [shape: f32[16,280], index: 4, kind: input, shape index: {}]   ;;  %s5682_s5 = inlined_call_operand.vmem [shape: f32[16,280], index: 5, kind: input, shape index: {}]   ;;  %s5683_s6 = inlined_call_operand.vmem [shape: f32[3,32,16], index: 6, kind: input, shape index: {}]   ;;  %s5684_s7 = inlined_call_operand.hbm [shape: f32[2,16,16], index: 7, kind: output, shape index: {}]  }
   0x1   :  { %12 = sst [smem:[#allocation2]] %s5678_s1 }
   0x2   :  { %13 = vsyncpa [#allocation5], 0 }
   0x3   :  { %14 = vsyncpa [#allocation4], 0 }
   0x4   :  { %16 = vsyncpa [#allocation4 + $0x1], 0  ;;  %s3366_s26 = smov 0   ;;  %s3368_s27 = smov 0  }
   0x5   :  { %s3370_s28 = smov 0   ;;  %s3372_s29 = smov 0  }
   0x6 LB: > { %s3387_s1 = sadd.s32 4294967295, %s3314_s29   ;;  %s2711_s30 = sadd.s32 4294967294, %s3314_s29   ;;  %s3314_s29 = sphi %s3372_s29, %s6368_s29   ;;  %s3310_s28 = sphi %s3370_s28, %s6367_s28   ;;  %s3306_s27 = sphi %s3368_s27, %s6366_s27   ;;  %s3302_s26 = sphi %s3366_s26, %s6365_s26  }
   0x7   : > { %s3391_s8 = sadd.s32 1, %s3314_s29   ;;  %s155_s9 = sadd.s32 1, %s3310_s28 }
   0x8   : > { %s152_s10 = ssub.s32 %s3314_s29, %s3391_s8  ;;  %p162_p0 = scmp.ne.s32.totalorder %s3310_s28, %s3306_s27 }
   0x9   : > { %p153_p1 = scmp.eq.s32.totalorder %s152_s10, 0  ;;  %p163_p2 = scmp.eq.s32.totalorder %s3314_s29, 0 }
   0xa   : > { %p192_p3 = scmp.eq.s32.totalorder %s3387_s1, 1  ;;  %p197_p4 = scmp.ne.s32.totalorder %s3306_s27, %s3302_s26 }
   0xb   : > { %s3403_s11 = scalar_select %p153_p1, %s3310_s28, %s155_s9  }
   0xc   : > { %p3405_p5 = por %p163_p2, %p162_p0  ;;  %p3409_p6 = por %p192_p3, %p162_p0 }
   0xd   : > { %p198_p7 = scmp.eq.s32.totalorder %s2711_s30, 1  ;;  %p2712_p8 = scmp.ge.s32.totalorder %s3314_s29, 1 }
   0xe   : > { %s5946_s13 = scalar_select %p3409_p6, 1, 0 }
   0xf   : > { %p205_p9 = scmp.lt.s32.totalorder %s3314_s29, 3  ;;  %p3415_p10 = por %p198_p7, %p197_p4 }
  0x10   : > { %p3190_p11 = scmp.eq.s32.totalorder %s3387_s1, 0  ;;  %s218_s18 = sshll.u32 %s5677_s0, 4  ;;  %s219_s18 = int_to_ptr.vmem [resolvable:$true] %s218_s18 }
  0x11   : > { %s5947_s14 = scalar_select %p3415_p10, 1, 0 }
  0x12   : > { %p3420_p12 = pnand %p2712_p8, %p205_p9  ;;  %s3233_s19 = scalar_lea.vmem %s219_s18, 16 }
  0x13   : > { %p3234_p1 = scmp.ne.s32.totalorder %s219_s18, %s3233_s19  ;;  %p3241_p7 = scmp.lt.s32.totalorder %s219_s18, %s219_s18 }
  0x14   : > { %p3182_p13 = pneg %p3420_p12  ;;  %p3242_p8 = scmp.lt.s32.totalorder %s3233_s19, %s3233_s19 }
  0x16   : > { %p3183_p0 = pnand %p3190_p11, %p3182_p13  ;;  %p3243_p9 = por %p3242_p8, %p3241_p7 }
  0x18   : > { %p3235_p2 = pneg %p3183_p0 }
  0x1a   : > { %p3236_p3 = pnand %p3235_p2, %p3234_p1 }
  0x1c   : > { %p3237_p4 = pneg %p3236_p3 }
  0x1e   : > { %p3244_p10 = pnand %p3243_p9, %p3237_p4 }
  0x20   : > { %3247 = shalt.err (!%p3244_p10)
}
  0x21   : > { %s3316_s20 = smov [#allocation3]   ;;  %p2714_p6 = scmp.ge.s32.totalorder %s3314_s29, 2 }
  0x22   : > { %3185 = dma.vmem_to_smem (!%p3183_p0), %s219_s18, 16, %s3316_s20, [#allocation5]  }
  0x23   : > { %240 = sbr.rel (%p2714_p6) target bundleno = 49 (0x31), region = 40 }
  0x2a   : > { %243 = sbr.rel (!%p3405_p5) target bundleno = 49 (0x31), region = 44  ;;  %s245_s21 = sand.u32 (%p3405_p5), 1, %s3310_s28  }
  0x2b   : > { %s2813_s22 = sshll.u32 (%p3405_p5), %s3314_s29, 4  ;;  %s3168_s23 = smul.u32 (%p3405_p5), 48, %s245_s21 }
  0x2c   : > { %s250_s30 = scalar_lea.vmem (%p3405_p5), %s5683_s6, %s2813_s22 }
  0x2d   : > { %v288_v0 = vld [vmem:[%s250_s30] sm:$0xff] (%p3405_p5)  ;;  %v290_v1 = vld [vmem:[%s250_s30 + $0x8] sm:$0xff] (%p3405_p5)  ;;  %s247_s9 = scalar_lea.vmem (%p3405_p5), [#allocation6], %s3168_s23 }
  0x2e   : > { %v292_v2 = vld [vmem:[%s250_s30 + $0x20] sm:$0xff] (%p3405_p5)  ;;  %v294_v3 = vld [vmem:[%s250_s30 + $0x28] sm:$0xff] (%p3405_p5)  ;;  %289 = vst [vmem:[%s247_s9] sm:$0xff] (%p3405_p5), %v288_v0  ;;  %291 = vst [vmem:[%s247_s9 + $0x8] sm:$0xff] (%p3405_p5), %v290_v1 }
  0x2f   : > { %v296_v4 = vld [vmem:[%s250_s30 + $0x40] sm:$0xff] (%p3405_p5)  ;;  %v298_v5 = vld [vmem:[%s250_s30 + $0x48] sm:$0xff] (%p3405_p5)  ;;  %293 = vst [vmem:[%s247_s9 + $0x10] sm:$0xff] (%p3405_p5), %v292_v2  ;;  %295 = vst [vmem:[%s247_s9 + $0x18] sm:$0xff] (%p3405_p5), %v294_v3 }
  0x30   : > { %297 = vst [vmem:[%s247_s9 + $0x20] sm:$0xff] (%p3405_p5), %v296_v4  ;;  %299 = vst [vmem:[%s247_s9 + $0x28] sm:$0xff] (%p3405_p5), %v298_v5 }
  0x31 PF: > { %308 = sbr.rel (%p3420_p12) target bundleno = 1518 (0x5ee), region = 82 }
  0x38   : > { %3293 = dma.done.wait (%p3190_p11), [#allocation5], 16  }
  0x39   : > { %3295 = vsyncadd (%p3190_p11), [#allocation5], 4294967280  ;;  %s3448_s10 = sand.u32 1, %s3306_s27  }
  0x3a   : > { %s3169_s12 = smul.u32 48, %s3448_s10 }
  0x3c   : > { %s317_s16 = scalar_lea.vmem [#allocation6], %s3169_s12 }
  0x3d   : > { %321 = sfence }
  0x3e   : > { %v377_v6 = vld [vmem:[%s5679_s2 + $0x8] sm:$0xff]  ;;  %v380_v7 = vld [vmem:[%s5679_s2 + $0x20] sm:$0xff]  ;;  %s350_s22 = sld [smem:[#allocation3]]  ;;  %v379_v10 = vld [vmem:[%s5679_s2 + $0x18] sm:$0xff]  ;;  %v5712_v13 = vmov 0.0   ;;  %s2722_s17 = sld [smem:[#allocation3 + $0x1]] }
  0x3f   : > { %v376_v8 = vld [vmem:[%s5679_s2] sm:$0xff]  ;;  %v3035_v9 = vpack.c.bf16 %v380_v7, %v377_v6  ;;  %v378_v11 = vld [vmem:[%s5679_s2 + $0x10] sm:$0xff]  ;;  %v381_v12 = vld [vmem:[%s5679_s2 + $0x28] sm:$0xff]  ;;  %453 = vmatprep.mubr.f32.mxu0 %v5712_v13  ;;  %s2725_s18 = sld [smem:[#allocation3 + $0x2]]  ;;  %s372_s19 = sld [smem:[#allocation2]]  ;;  %vm5686_vm0 = vcmask 130048  }
  0x40   : > { %v3037_v14 = vpack.c.bf16 %v379_v10, %v376_v8  ;;  %v3039_v15 = vpack.c.bf16 %v381_v12, %v378_v11  ;;  %v348_v16 = vld [vmem:[%s317_s16] sm:$0xff]  ;;  %v349_v17 = vld [vmem:[%s317_s16 + $0x8] sm:$0xff]  ;;  %v2720_v18 = vld [vmem:[%s317_s16 + $0x10] sm:$0xff]  ;;  %v3318_v38 = vmov 0.0|0.0   ;;  %vm3319_vm1 = vmmov 0   ;;  %s2618_s25 = scalar_lea.sflag [#allocation4], %s3448_s10 }
  0x41   : > { %3036 = vmatprep.subr.bf16.mxu0 %v3035_v9  ;;  %v2721_v19 = vld [vmem:[%s317_s16 + $0x18] sm:$0xff]  ;;  %v2723_v21 = vld [vmem:[%s317_s16 + $0x20] sm:$0xff]  ;;  %v2724_v22 = vld [vmem:[%s317_s16 + $0x28] sm:$0xff]  ;;  %vm1523_vm4 = vcmask 195584   ;;  %s2719_s16 = sshll.u32 %s3448_s10, 4  ;;  %p6363_p11 = scmp.ne.s32.totalorder %s5946_s13, 0 }
  0x42   : > { %3038 = vmatpush1.bf16.msra.mxu0 %v3037_v14  ;;  %3040 = vmatprep.subr.bf16.mxu1 %v3039_v15  ;;  %v541_v47 = vld [vmem:[%s5680_s3] sm:$0xff]  ;;  %v542_v49 = vld [vmem:[%s5680_s3 + $0x8] sm:$0xff]  ;;  %v543_v50 = vld [vmem:[%s5680_s3 + $0x10] sm:$0xff]  ;;  %s346_s15 = scalar_lea.vmem [#allocation7], %s2719_s16 }
  0x43   : > { %3042 = vmatpush3.bf16.msra.mxu1 %v3039_v15  ;;  %3047 = vmatprep.subr.bf16.mxu0 %v3318_v38  ;;  %v544_v51 = vld [vmem:[%s5680_s3 + $0x18] sm:$0xff]  ;;  %v545_v52 = vld [vmem:[%s5680_s3 + $0x20] sm:$0xff]  ;;  %v546_v53 = vld [vmem:[%s5680_s3 + $0x28] sm:$0xff] }
  0x44   : > { %v351_v20 = vstv %s350_s22  ;;  %v358_v24 = vstv %s2722_s17  ;;  %v547_v54 = vld [vmem:[%s5680_s3 + $0x30] sm:$0xff]  ;;  %v548_v55 = vld [vmem:[%s5680_s3 + $0x38] sm:$0xff] }
  0x45   : > { %v352_v23 = vmul.f32 %v351_v20, %v348_v16  ;;  %v353_v25 = vmul.f32 %v351_v20, %v349_v17  ;;  %v359_v26 = vmul.f32 %v2720_v18, %v358_v24  ;;  %v367_v27 = vstv %s2725_s18  ;;  %v549_v56 = vld [vmem:[%s5680_s3 + $0x40] sm:$0xff]  ;;  %v550_v57 = vld [vmem:[%s5680_s3 + $0x48] sm:$0xff]  ;;  %v551_v58 = vld [vmem:[%s5680_s3 + $0x50] sm:$0xff] }
  0x46   : > { %v360_v28 = vmul.f32 %v2721_v19, %v358_v24  ;;  %v368_v29 = vmul.f32 %v2723_v21, %v367_v27  ;;  %v369_v30 = vmul.f32 %v2724_v22, %v367_v27  ;;  %v373_v33 = vstv %s372_s19  ;;  %v552_v59 = vld [vmem:[%s5680_s3 + $0x58] sm:$0xff]  ;;  %v553_v60 = vld [vmem:[%s5680_s3 + $0x60] sm:$0xff]  ;;  %v554_v61 = vld [vmem:[%s5680_s3 + $0x68] sm:$0xff] }
  0x47   : > { %v361_v31 = vadd.f32 %v359_v26, %v352_v23  ;;  %v555_v62 = vld [vmem:[%s5680_s3 + $0x70] sm:$0xff]  ;;  %v556_v63 = vld [vmem:[%s5680_s3 + $0x78] sm:$0xff]  ;;  %v557_v0 = vld [vmem:[%s5680_s3 + $0x80] sm:$0xff] }
  0x48   : > { %v362_v32 = vadd.f32 %v360_v28, %v353_v25  ;;  %v558_v1 = vld [vmem:[%s5680_s3 + $0x88] sm:$0xff]  ;;  %v559_v2 = vld [vmem:[%s5680_s3 + $0x90] sm:$0xff]  ;;  %v560_v3 = vld [vmem:[%s5680_s3 + $0x98] sm:$0xff] }
  0x49   : > { %v370_v34 = vadd.f32 %v368_v29, %v361_v31  ;;  %v561_v4 = vld [vmem:[%s5680_s3 + $0xa0] sm:$0xff]  ;;  %v562_v5 = vld [vmem:[%s5680_s3 + $0xa8] sm:$0xff]  ;;  %v563_v6 = vld [vmem:[%s5680_s3 + $0xb0] sm:$0xff] }
  0x4a   : > { %v371_v35 = vadd.f32 %v369_v30, %v362_v32  ;;  %v564_v7 = vld [vmem:[%s5680_s3 + $0xb8] sm:$0xff]  ;;  %v565_v8 = vld [vmem:[%s5680_s3 + $0xc0] sm:$0xff]  ;;  %v566_v9 = vld [vmem:[%s5680_s3 + $0xc8] sm:$0xff] }
  0x4b   : > { %v374_v36 = vadd.f32 %v373_v33, %v370_v34  ;;  %v567_v10 = vld [vmem:[%s5680_s3 + $0xd0] sm:$0xff]  ;;  %v568_v11 = vld [vmem:[%s5680_s3 + $0xd8] sm:$0xff]  ;;  %v569_v12 = vld [vmem:[%s5680_s3 + $0xe0] sm:$0xff] }
  0x4c   : > { %v375_v37 = vadd.f32 %v373_v33, %v371_v35  ;;  %v570_v14 = vld [vmem:[%s5680_s3 + $0xe8] sm:$0xff]  ;;  %v571_v15 = vld [vmem:[%s5680_s3 + $0xf0] sm:$0xff]  ;;  %v572_v16 = vld [vmem:[%s5680_s3 + $0xf8] sm:$0xff] }
  0x4d   : > { %2726 = vmatmul.mubr.msk.f32.vlgmr.msra.gmra.mrb[0].mxu0 %vm5686_vm0, %v374_v36  ;;  %2907 = vmatprep.mubr.msk.f32.mxu1 %vm5686_vm0, %v374_v36  ;;  %v573_v17 = vld [vmem:[%s5680_s3 + $0x100] sm:$0xff]  ;;  %v574_v18 = vld [vmem:[%s5680_s3 + $0x108] sm:$0xff]  ;;  %v575_v19 = vld [vmem:[%s5680_s3 + $0x110] sm:$0xff] }
  0x4e   : > { %2908 = vmatmul.mubr.msk.f32.vlgmr.msra.gmra.mrb[0].mxu1 %vm5686_vm0, %v375_v37  ;;  %459 = vmatprep.mubr.f32.mxu0 %v5712_v13 }
  0x4f   : > { %757 = vmatprep.mubr.f32.mxu1 %v5712_v13 }
  0x51   : > { %2727 = vmatmul.mubr.msk.f32.gmra.mrb[2].mxu0 %vm5686_vm0, %v375_v37 }
  0x52   : > { %2914 = vmatprep.mubr.msk.f32.mxu0 %vm3319_vm1, %v5712_v13 }
 0x120   : > { %v455_v39 = vpop.f32.mrb[0].mxu0 }
 0x121   : > { %v457_v40 = vpop.f32.mrb[1].mxu0  ;;  %v2909_v41 = vpop.f32.mrb[0].mxu1 }
 0x122   : > { %v532_v42 = vpop.f32.mrb[1].mxu1 }
 0x123   : > { %v3048_v43 = vpack.c.bf16 %v2909_v41, %v532_v42 }
 0x124   : > { %v461_v44 = vpop.f32.mrb[2].mxu0 }
 0x125   : > { %v3045_v45 = vpack.c.bf16 %v461_v44, %v455_v39  ;;  %v463_v46 = vpop.f32.mrb[3].mxu0  ;;  %3049 = vmatpush3.bf16.msra.mxu0 %v3048_v43 }
 0x126   : > { %v3043_v48 = vpack.c.bf16 %v463_v46, %v457_v40 }
 0x128   : > { %3044 = vmatprep.subr.bf16.mxu1 %v3043_v48  ;;  %2915 = vmatmul.mubr.msk.f32.vlgmr.msra.gmra.mrb[4].mxu0 %vm5686_vm0, %v541_v47 }
 0x129   : > { %3046 = vmatpush1.bf16.msra.mxu1 %v3045_v45  ;;  %2917 = vmatprep.mubr.msk.f32.mxu0 %vm3319_vm1, %v5712_v13 }
 0x12c   : > { %2730 = vmatmul.mubr.msk.f32.vlgmr.msra.gmra.mrb[2].mxu1 %vm5686_vm0, %v541_v47  ;;  %2918 = vmatmul.mubr.msk.f32.gmra.mrb[6].mxu0 %vm5686_vm0, %v542_v49 }
 0x12d   : > { %763 = vmatprep.mubr.f32.mxu1 %v5712_v13  ;;  %2920 = vmatprep.mubr.msk.f32.mxu0 %vm3319_vm1, %v5712_v13 }
 0x130   : > { %2731 = vmatmul.mubr.msk.f32.gmra.mrb[4].mxu1 %vm5686_vm0, %v542_v49  ;;  %2921 = vmatmul.mubr.msk.f32.gmra.mrb[8].mxu0 %vm5686_vm0, %v543_v50 }
 0x131   : > { %769 = vmatprep.mubr.f32.mxu1 %v5712_v13  ;;  %2923 = vmatprep.mubr.msk.f32.mxu0 %vm3319_vm1, %v5712_v13 }
 0x134   : > { %2732 = vmatmul.mubr.msk.f32.gmra.mrb[6].mxu1 %vm5686_vm0, %v543_v50  ;;  %2924 = vmatmul.mubr.msk.f32.gmra.mrb[10].mxu0 %vm5686_vm0, %v544_v51 }
 0x135   : > { %775 = vmatprep.mubr.f32.mxu1 %v5712_v13  ;;  %2926 = vmatprep.mubr.msk.f32.mxu0 %vm3319_vm1, %v5712_v13 }
 0x138   : > { %2733 = vmatmul.mubr.msk.f32.gmra.mrb[8].mxu1 %vm5686_vm0, %v544_v51  ;;  %2927 = vmatmul.mubr.msk.f32.gmra.mrb[12].mxu0 %vm5686_vm0, %v545_v52 }
 0x139   : > { %781 = vmatprep.mubr.f32.mxu1 %v5712_v13  ;;  %2929 = vmatprep.mubr.msk.f32.mxu0 %vm3319_vm1, %v5712_v13 }
 0x13c   : > { %2734 = vmatmul.mubr.msk.f32.gmra.mrb[10].mxu1 %vm5686_vm0, %v545_v52  ;;  %2930 = vmatmul.mubr.msk.f32.gmra.mrb[14].mxu0 %vm5686_vm0, %v546_v53 }
 0x13d   : > { %787 = vmatprep.mubr.f32.mxu1 %v5712_v13  ;;  %2932 = vmatprep.mubr.msk.f32.mxu0 %vm3319_vm1, %v5712_v13 }
 0x140   : > { %2735 = vmatmul.mubr.msk.f32.gmra.mrb[12].mxu1 %vm5686_vm0, %v546_v53  ;;  %2933 = vmatmul.mubr.msk.f32.gmra.mrb[16].mxu0 %vm5686_vm0, %v547_v54 }
 0x141   : > { %793 = vmatprep.mubr.f32.mxu1 %v5712_v13  ;;  %2935 = vmatprep.mubr.msk.f32.mxu0 %vm3319_vm1, %v5712_v13 }
 0x144   : > { %2736 = vmatmul.mubr.msk.f32.gmra.mrb[14].mxu1 %vm5686_vm0, %v547_v54  ;;  %2936 = vmatmul.mubr.msk.f32.gmra.mrb[18].mxu0 %vm5686_vm0, %v548_v55 }
 0x145   : > { %799 = vmatprep.mubr.f32.mxu1 %v5712_v13  ;;  %2938 = vmatprep.mubr.msk.f32.mxu0 %vm3319_vm1, %v5712_v13 }
 0x148   : > { %2737 = vmatmul.mubr.msk.f32.gmra.mrb[16].mxu1 %vm5686_vm0, %v548_v55  ;;  %2939 = vmatmul.mubr.msk.f32.gmra.mrb[20].mxu0 %vm5686_vm0, %v549_v56 }
 0x149   : > { %805 = vmatprep.mubr.f32.mxu1 %v5712_v13  ;;  %2941 = vmatprep.mubr.msk.f32.mxu0 %vm3319_vm1, %v5712_v13 }
 0x14c   : > { %2738 = vmatmul.mubr.msk.f32.gmra.mrb[18].mxu1 %vm5686_vm0, %v549_v56  ;;  %2942 = vmatmul.mubr.msk.f32.gmra.mrb[22].mxu0 %vm5686_vm0, %v550_v57 }
 0x14d   : > { %811 = vmatprep.mubr.f32.mxu1 %v5712_v13  ;;  %2944 = vmatprep.mubr.msk.f32.mxu0 %vm3319_vm1, %v5712_v13 }
 0x150   : > { %2739 = vmatmul.mubr.msk.f32.gmra.mrb[20].mxu1 %vm5686_vm0, %v550_v57  ;;  %2945 = vmatmul.mubr.msk.f32.gmra.mrb[24].mxu0 %vm5686_vm0, %v551_v58 }
 0x151   : > { %817 = vmatprep.mubr.f32.mxu1 %v5712_v13  ;;  %2947 = vmatprep.mubr.msk.f32.mxu0 %vm3319_vm1, %v5712_v13 }
 0x154   : > { %2740 = vmatmul.mubr.msk.f32.gmra.mrb[22].mxu1 %vm5686_vm0, %v551_v58  ;;  %2948 = vmatmul.mubr.msk.f32.gmra.mrb[26].mxu0 %vm5686_vm0, %v552_v59 }
 0x155   : > { %823 = vmatprep.mubr.f32.mxu1 %v5712_v13  ;;  %2950 = vmatprep.mubr.msk.f32.mxu0 %vm3319_vm1, %v5712_v13 }
 0x158   : > { %2741 = vmatmul.mubr.msk.f32.gmra.mrb[24].mxu1 %vm5686_vm0, %v552_v59  ;;  %2951 = vmatmul.mubr.msk.f32.gmra.mrb[28].mxu0 %vm5686_vm0, %v553_v60 }
 0x159   : > { %829 = vmatprep.mubr.f32.mxu1 %v5712_v13  ;;  %2953 = vmatprep.mubr.msk.f32.mxu0 %vm3319_vm1, %v5712_v13 }
 0x15c   : > { %2742 = vmatmul.mubr.msk.f32.gmra.mrb[26].mxu1 %vm5686_vm0, %v553_v60  ;;  %2954 = vmatmul.mubr.msk.f32.gmra.mrb[30].mxu0 %vm5686_vm0, %v554_v61 }
 0x15d   : > { %835 = vmatprep.mubr.f32.mxu1 %v5712_v13  ;;  %2956 = vmatprep.mubr.msk.f32.mxu0 %vm3319_vm1, %v5712_v13 }
 0x160   : > { %2743 = vmatmul.mubr.msk.f32.gmra.mrb[28].mxu1 %vm5686_vm0, %v554_v61  ;;  %2957 = vmatmul.mubr.msk.f32.gmra.mrb[32].mxu0 %vm5686_vm0, %v555_v62 }
 0x161   : > { %841 = vmatprep.mubr.f32.mxu1 %v5712_v13  ;;  %2959 = vmatprep.mubr.msk.f32.mxu0 %vm3319_vm1, %v5712_v13 }
 0x164   : > { %2744 = vmatmul.mubr.msk.f32.gmra.mrb[30].mxu1 %vm5686_vm0, %v555_v62  ;;  %2960 = vmatmul.mubr.msk.f32.gmra.mrb[34].mxu0 %vm5686_vm0, %v556_v63 }
 0x165   : > { %847 = vmatprep.mubr.f32.mxu1 %v5712_v13  ;;  %2962 = vmatprep.mubr.msk.f32.mxu0 %vm3319_vm1, %v5712_v13 }
 0x168   : > { %2745 = vmatmul.mubr.msk.f32.gmra.mrb[32].mxu1 %vm5686_vm0, %v556_v63  ;;  %2963 = vmatmul.mubr.msk.f32.gmra.mrb[36].mxu0 %vm5686_vm0, %v557_v0 }
 0x169   : > { %853 = vmatprep.mubr.f32.mxu1 %v5712_v13  ;;  %2965 = vmatprep.mubr.msk.f32.mxu0 %vm3319_vm1, %v5712_v13 }
 0x16c   : > { %2746 = vmatmul.mubr.msk.f32.gmra.mrb[34].mxu1 %vm5686_vm0, %v557_v0  ;;  %2966 = vmatmul.mubr.msk.f32.gmra.mrb[38].mxu0 %vm5686_vm0, %v558_v1 }
 0x16d   : > { %859 = vmatprep.mubr.f32.mxu1 %v5712_v13  ;;  %2968 = vmatprep.mubr.msk.f32.mxu0 %vm3319_vm1, %v5712_v13 }
 0x170   : > { %2747 = vmatmul.mubr.msk.f32.gmra.mrb[36].mxu1 %vm5686_vm0, %v558_v1  ;;  %2969 = vmatmul.mubr.msk.f32.gmra.mrb[40].mxu0 %vm5686_vm0, %v559_v2 }
 0x171   : > { %865 = vmatprep.mubr.f32.mxu1 %v5712_v13  ;;  %2971 = vmatprep.mubr.msk.f32.mxu0 %vm3319_vm1, %v5712_v13 }
 0x174   : > { %2748 = vmatmul.mubr.msk.f32.gmra.mrb[38].mxu1 %vm5686_vm0, %v559_v2  ;;  %2972 = vmatmul.mubr.msk.f32.gmra.mrb[42].mxu0 %vm5686_vm0, %v560_v3 }
 0x175   : > { %871 = vmatprep.mubr.f32.mxu1 %v5712_v13  ;;  %2974 = vmatprep.mubr.msk.f32.mxu0 %vm3319_vm1, %v5712_v13 }
 0x178   : > { %2749 = vmatmul.mubr.msk.f32.gmra.mrb[40].mxu1 %vm5686_vm0, %v560_v3  ;;  %2975 = vmatmul.mubr.msk.f32.gmra.mrb[44].mxu0 %vm5686_vm0, %v561_v4 }
 0x179   : > { %877 = vmatprep.mubr.f32.mxu1 %v5712_v13  ;;  %2977 = vmatprep.mubr.msk.f32.mxu0 %vm3319_vm1, %v5712_v13 }
 0x17c   : > { %2750 = vmatmul.mubr.msk.f32.gmra.mrb[42].mxu1 %vm5686_vm0, %v561_v4  ;;  %2978 = vmatmul.mubr.msk.f32.gmra.mrb[46].mxu0 %vm5686_vm0, %v562_v5 }
 0x17d   : > { %883 = vmatprep.mubr.f32.mxu1 %v5712_v13  ;;  %2980 = vmatprep.mubr.msk.f32.mxu0 %vm3319_vm1, %v5712_v13 }
 0x180   : > { %2751 = vmatmul.mubr.msk.f32.gmra.mrb[44].mxu1 %vm5686_vm0, %v562_v5  ;;  %2981 = vmatmul.mubr.msk.f32.gmra.mrb[48].mxu0 %vm5686_vm0, %v563_v6 }
 0x181   : > { %889 = vmatprep.mubr.f32.mxu1 %v5712_v13  ;;  %2983 = vmatprep.mubr.msk.f32.mxu0 %vm3319_vm1, %v5712_v13 }
 0x184   : > { %2752 = vmatmul.mubr.msk.f32.gmra.mrb[46].mxu1 %vm5686_vm0, %v563_v6  ;;  %2984 = vmatmul.mubr.msk.f32.gmra.mrb[50].mxu0 %vm5686_vm0, %v564_v7 }
 0x185   : > { %895 = vmatprep.mubr.f32.mxu1 %v5712_v13  ;;  %2986 = vmatprep.mubr.msk.f32.mxu0 %vm3319_vm1, %v5712_v13 }
 0x188   : > { %2753 = vmatmul.mubr.msk.f32.gmra.mrb[48].mxu1 %vm5686_vm0, %v564_v7  ;;  %2987 = vmatmul.mubr.msk.f32.gmra.mrb[52].mxu0 %vm5686_vm0, %v565_v8 }
 0x189   : > { %901 = vmatprep.mubr.f32.mxu1 %v5712_v13  ;;  %2989 = vmatprep.mubr.msk.f32.mxu0 %vm3319_vm1, %v5712_v13 }
 0x18c   : > { %2754 = vmatmul.mubr.msk.f32.gmra.mrb[50].mxu1 %vm5686_vm0, %v565_v8  ;;  %2990 = vmatmul.mubr.msk.f32.gmra.mrb[54].mxu0 %vm5686_vm0, %v566_v9 }
 0x18d   : > { %907 = vmatprep.mubr.f32.mxu1 %v5712_v13  ;;  %2992 = vmatprep.mubr.msk.f32.mxu0 %vm3319_vm1, %v5712_v13 }
 0x190   : > { %2755 = vmatmul.mubr.msk.f32.gmra.mrb[52].mxu1 %vm5686_vm0, %v566_v9  ;;  %2993 = vmatmul.mubr.msk.f32.gmra.mrb[56].mxu0 %vm5686_vm0, %v567_v10 }
 0x191   : > { %913 = vmatprep.mubr.f32.mxu1 %v5712_v13  ;;  %2995 = vmatprep.mubr.msk.f32.mxu0 %vm3319_vm1, %v5712_v13 }
 0x194   : > { %2756 = vmatmul.mubr.msk.f32.gmra.mrb[54].mxu1 %vm5686_vm0, %v567_v10  ;;  %2996 = vmatmul.mubr.msk.f32.gmra.mrb[58].mxu0 %vm5686_vm0, %v568_v11 }
 0x195   : > { %919 = vmatprep.mubr.f32.mxu1 %v5712_v13  ;;  %2998 = vmatprep.mubr.msk.f32.mxu0 %vm3319_vm1, %v5712_v13 }
 0x198   : > { %2757 = vmatmul.mubr.msk.f32.gmra.mrb[56].mxu1 %vm5686_vm0, %v568_v11  ;;  %2999 = vmatmul.mubr.msk.f32.gmra.mrb[60].mxu0 %vm5686_vm0, %v569_v12 }
 0x199   : > { %925 = vmatprep.mubr.f32.mxu1 %v5712_v13  ;;  %3001 = vmatprep.mubr.msk.f32.mxu0 %vm3319_vm1, %v5712_v13 }
 0x19c   : > { %2758 = vmatmul.mubr.msk.f32.gmra.mrb[58].mxu1 %vm5686_vm0, %v569_v12  ;;  %3002 = vmatmul.mubr.msk.f32.gmra.mrb[62].mxu0 %vm5686_vm0, %v570_v14 }
 0x19d   : > { %931 = vmatprep.mubr.f32.mxu1 %v5712_v13  ;;  %3004 = vmatprep.mubr.msk.f32.mxu0 %vm3319_vm1, %v5712_v13 }
 0x1a0   : > { %2759 = vmatmul.mubr.msk.f32.gmra.mrb[60].mxu1 %vm5686_vm0, %v570_v14  ;;  %3005 = vmatmul.mubr.msk.f32.gmra.mrb[64].mxu0 %vm5686_vm0, %v571_v15 }
 0x1a1   : > { %937 = vmatprep.mubr.f32.mxu1 %v5712_v13  ;;  %3007 = vmatprep.mubr.msk.f32.mxu0 %vm3319_vm1, %v5712_v13 }
 0x1a4   : > { %2760 = vmatmul.mubr.msk.f32.gmra.mrb[62].mxu1 %vm5686_vm0, %v571_v15  ;;  %3008 = vmatmul.mubr.msk.f32.gmra.mrb[66].mxu0 %vm5686_vm0, %v572_v16 }
 0x1a5   : > { %943 = vmatprep.mubr.f32.mxu1 %v5712_v13  ;;  %3010 = vmatprep.mubr.msk.f32.mxu0 %vm3319_vm1, %v5712_v13 }
 0x1a8   : > { %2761 = vmatmul.mubr.msk.f32.gmra.mrb[64].mxu1 %vm5686_vm0, %v572_v16  ;;  %3011 = vmatmul.mubr.msk.f32.gmra.mrb[68].mxu0 %vm5686_vm0, %v573_v17 }
 0x1a9   : > { %949 = vmatprep.mubr.f32.mxu1 %v5712_v13  ;;  %3013 = vmatprep.mubr.msk.f32.mxu0 %vm3319_vm1, %v5712_v13 }
 0x1ac   : > { %2762 = vmatmul.mubr.msk.f32.gmra.mrb[66].mxu1 %vm5686_vm0, %v573_v17  ;;  %3014 = vmatmul.mubr.msk.f32.gmra.mrb[70].mxu0 %vm5686_vm0, %v574_v18 }
 0x1ad   : > { %955 = vmatprep.mubr.f32.mxu1 %v5712_v13  ;;  %3016 = vmatprep.mubr.msk.f32.mxu0 %vm3319_vm1, %v5712_v13 }
 0x1b0   : > { %2763 = vmatmul.mubr.msk.f32.gmra.mrb[68].mxu1 %vm5686_vm0, %v574_v18  ;;  %3017 = vmatmul.mubr.msk.f32.gmra.mrb[72].mxu0 %vm5686_vm0, %v575_v19 }
 0x1b1   : > { %961 = vmatprep.mubr.f32.mxu1 %v5712_v13 }
 0x1b4   : > { %2764 = vmatmul.mubr.msk.f32.gmra.mrb[70].mxu1 %vm5686_vm0, %v575_v19 }
 0x1fb   : > { %v1034_v20 = vpop.f32.mrb[4].mxu0 }
 0x1fc   : > { %v3755_v21 = vmax.f32 %v1034_v20, 0.0  ;;  %v2916_v22 = vpop.f32.mrb[5].mxu0 }
 0x1fe   : > { %vm5908_vm2 = vcmp.eq.f32.partialorder %v3755_v21, 0.0  ;;  %v1672_v40 = vsel %vm1523_vm4, %v3755_v21, -inf }
 0x1ff   : > { %v759_v23 = vpop.f32.mrb[2].mxu1  ;;  %v1039_v24 = vpop.f32.mrb[6].mxu0  ;;  %v1420_v30 = vsel %vm5908_vm2, inf, %v3755_v21 }
 0x200   : > { %v3758_v25 = vmax.f32 %v759_v23, 0.0  ;;  %v3760_v26 = vmax.f32 %v1039_v24, 0.0  ;;  %v761_v27 = vpop.f32.mrb[3].mxu1  ;;  %v2919_v28 = vpop.f32.mrb[7].mxu0  ;;  %v1524_v39 = vsel %vm1523_vm4, %v1420_v30, inf }
 0x201   : > { %v3762_v29 = vmax.f32 %v761_v27, 0.0 }
 0x202   : > { %vm5907_vm3 = vcmp.eq.f32.partialorder %v3760_v26, 0.0  ;;  %vm1313_vm5 = vcmp.eq.f32.partialorder %v3758_v25, 0.0  ;;  %v1674_v41 = vsel %vm1523_vm4, %v3760_v26, -inf }
 0x203   : > { %v765_v31 = vpop.f32.mrb[4].mxu1  ;;  %v1044_v32 = vpop.f32.mrb[8].mxu0  ;;  %v1423_v33 = vsel %vm5907_vm3, inf, %v3760_v26  ;;  %vm1314_vm6 = vcmp.eq.f32.partialorder %v3762_v29, 0.0  ;;  %v1418_v42 = vsel %vm1313_vm5, inf, %v3758_v25  ;;  %v1675_v53 = vmax.f32 %v3762_v29, %v1674_v41 }
 0x204   : > { %v767_v34 = vpop.f32.mrb[5].mxu1  ;;  %v3773_v35 = vmax.f32 %v1044_v32, 0.0  ;;  %v2922_v36 = vpop.f32.mrb[9].mxu0  ;;  %v3775_v37 = vmax.f32 %v765_v31, 0.0  ;;  %v1526_v43 = vsel %vm1523_vm4, %v1423_v33, inf  ;;  %v1419_v44 = vsel %vm1314_vm6, inf, %v3762_v29 }
 0x205   : > { %v3777_v38 = vmax.f32 %v767_v34, 0.0  ;;  %v1527_v58 = vmin.f32 %v1419_v44, %v1526_v43 }
 0x206   : > { %vm5758_vm7 = vcmp.eq.f32.partialorder %v3773_v35, 0.0  ;;  %vm1316_vm9 = vcmp.eq.f32.partialorder %v3775_v37, 0.0  ;;  %v1678_v57 = vsel %vm1523_vm4, %v3773_v35, -inf }
 0x207   : > { %vm1317_vm8 = vcmp.eq.f32.partialorder %v3777_v38, 0.0  ;;  %v771_v45 = vpop.f32.mrb[6].mxu1  ;;  %v1049_v46 = vpop.f32.mrb[10].mxu0  ;;  %v1426_v48 = vsel %vm5758_vm7, inf, %v3773_v35  ;;  %v1673_v54 = vmax.f32 %v3758_v25, %v3777_v38  ;;  %v1421_v5 = vsel %vm1316_vm9, inf, %v3775_v37 }
 0x208   : > { %v1422_v47 = vsel %vm1317_vm8, inf, %v3777_v38  ;;  %v3799_v49 = vmax.f32 %v771_v45, 0.0  ;;  %v773_v50 = vpop.f32.mrb[7].mxu1  ;;  %v3801_v51 = vmax.f32 %v1049_v46, 0.0  ;;  %v2925_v52 = vpop.f32.mrb[11].mxu0  ;;  %v1530_v59 = vsel %vm1523_vm4, %v1426_v48, inf }
 0x209   : > { %v3807_v55 = vmax.f32 %v773_v50, 0.0  ;;  %v1525_v56 = vmin.f32 %v1418_v42, %v1422_v47  ;;  %v1679_v6 = vmax.f32 %v1673_v54, %v1678_v57 }
 0x20a   : > { %vm5780_vm10 = vcmp.eq.f32.partialorder %v3799_v49, 0.0  ;;  %vm5745_vm11 = vcmp.eq.f32.partialorder %v3801_v51, 0.0  ;;  %v1682_v7 = vsel %vm1523_vm4, %v3801_v51, -inf  ;;  %v1676_v10 = vmax.f32 %v1672_v40, %v3799_v49 }
 0x20b   : > { %v1424_v60 = vsel %vm5780_vm10, inf, %v3799_v49  ;;  %vm5906_vm12 = vcmp.eq.f32.partialorder %v3807_v55, 0.0  ;;  %v777_v61 = vpop.f32.mrb[8].mxu1  ;;  %v1054_v62 = vpop.f32.mrb[12].mxu0  ;;  %v1677_v0 = vmax.f32 %v3775_v37, %v3807_v55  ;;  %v1429_v1 = vsel %vm5745_vm11, inf, %v3801_v51 }
 0x20c   : > { %v1425_v63 = vsel %vm5906_vm12, inf, %v3807_v55  ;;  %v3826_v2 = vmax.f32 %v777_v61, 0.0  ;;  %v779_v3 = vpop.f32.mrb[9].mxu1  ;;  %v2928_v4 = vpop.f32.mrb[13].mxu0  ;;  %v3835_v9 = vmin.f32 %v1525_v56, %v1530_v59  ;;  %v3839_v11 = vmax.f32 %v1054_v62, 0.0 }
 0x20d   : > { %v3833_v8 = vmax.f32 %v779_v3, 0.0  ;;  %v1528_v12 = vmin.f32 %v1524_v39, %v1424_v60  ;;  %v1529_v14 = vmin.f32 %v1421_v5, %v1425_v63  ;;  %v1534_v15 = vsel %vm1523_vm4, %v1429_v1, inf }
 0x20e   : > { %vm5770_vm13 = vcmp.eq.f32.partialorder %v3826_v2, 0.0  ;;  %v3843_v18 = vmax.f32 %v1677_v0, %v1682_v7  ;;  %vm5687_vm15 = vcmp.eq.f32.partialorder %v3839_v11, 0.0  ;;  %v1680_v24 = vmax.f32 %v1675_v53, %v3826_v2 }
 0x20f   : > { %vm5905_vm14 = vcmp.eq.f32.partialorder %v3833_v8, 0.0  ;;  %v783_v16 = vpop.f32.mrb[10].mxu1  ;;  %v1059_v17 = vpop.f32.mrb[14].mxu0  ;;  %v1427_v19 = vsel %vm5770_vm13, inf, %v3826_v2  ;;  %v1681_v27 = vmax.f32 %v1676_v10, %v3833_v8  ;;  %v1432_v28 = vsel %vm5687_vm15, inf, %v3839_v11 }
 0x210   : > { %v1428_v20 = vsel %vm5905_vm14, inf, %v3833_v8  ;;  %v785_v22 = vpop.f32.mrb[11].mxu1  ;;  %v2931_v23 = vpop.f32.mrb[15].mxu0  ;;  %v3857_v30 = vmax.f32 %v783_v16, 0.0  ;;  %v1686_v32 = vsel %vm1523_vm4, %v3839_v11, -inf  ;;  %v3865_v34 = vmax.f32 %v1059_v17, 0.0 }
 0x211   : > { %v3859_v31 = vmin.f32 %v1528_v12, %v1428_v20  ;;  %v3863_v33 = vmax.f32 %v785_v22, 0.0  ;;  %v3867_v36 = vmin.f32 %v1529_v14, %v1534_v15  ;;  %v1532_v39 = vmin.f32 %v1527_v58, %v1427_v19 }
 0x212   : > { %v1538_v40 = vsel %vm1523_vm4, %v1432_v28, inf  ;;  %vm5689_vm1 = vcmp.eq.f32.partialorder %v3857_v30, 0.0  ;;  %vm5688_vm15 = vcmp.eq.f32.partialorder %v3865_v34, 0.0  ;;  %v1687_v47 = vmax.f32 %v1681_v27, %v1686_v32 }
 0x213   : > { %v789_v41 = vpop.f32.mrb[12].mxu1  ;;  %v1064_v42 = vpop.f32.mrb[16].mxu0  ;;  %v1430_v43 = vsel %vm5689_vm1, inf, %v3857_v30  ;;  %vm5690_vm0 = vcmp.eq.f32.partialorder %v3863_v33, 0.0  ;;  %v1685_v44 = vmax.f32 %v1680_v24, %v3863_v33  ;;  %v1435_v50 = vsel %vm5688_vm15, inf, %v3865_v34 }
 0x214   : > { %v791_v45 = vpop.f32.mrb[13].mxu1  ;;  %v2934_v46 = vpop.f32.mrb[17].mxu0  ;;  %v1431_v48 = vsel %vm5690_vm0, inf, %v3863_v33  ;;  %v1690_v52 = vsel %vm1523_vm4, %v3865_v34, -inf  ;;  %v1539_v53 = vmin.f32 %v3859_v31, %v1538_v40  ;;  %v1542_v56 = vsel %vm1523_vm4, %v1435_v50, inf }
 0x215   : > { %v1537_v54 = vmin.f32 %v1532_v39, %v1431_v48  ;;  %v3887_v57 = vmax.f32 %v789_v41, 0.0  ;;  %v1536_v58 = vmin.f32 %v3835_v9, %v1430_v43  ;;  %v1684_v59 = vmax.f32 %v1679_v6, %v3857_v30 }
 0x216   : > { %v3891_v60 = vmax.f32 %v791_v45, 0.0  ;;  %v3893_v61 = vmax.f32 %v1064_v42, 0.0  ;;  %v3897_v1 = vmax.f32 %v1685_v44, %v1690_v52 }
 0x217   : > { %v795_v62 = vpop.f32.mrb[14].mxu1  ;;  %v1069_v63 = vpop.f32.mrb[18].mxu0  ;;  %v3895_v0 = vmin.f32 %v1537_v54, %v1542_v56  ;;  %vm5691_vm15 = vcmp.eq.f32.partialorder %v3887_v57, 0.0  ;;  %v1688_v9 = vmax.f32 %v3843_v18, %v3887_v57 }
 0x218   : > { %v3900_v3 = vmax.f32 %v795_v62, 0.0  ;;  %v797_v4 = vpop.f32.mrb[15].mxu1  ;;  %v2937_v5 = vpop.f32.mrb[19].mxu0  ;;  %v1433_v6 = vsel %vm5691_vm15, inf, %v3887_v57  ;;  %vm5694_vm1 = vcmp.eq.f32.partialorder %v3891_v60, 0.0  ;;  %v3907_v7 = vmax.f32 %v1684_v59, %v3891_v60 }
 0x219   : > { %vm5692_vm0 = vcmp.eq.f32.partialorder %v3893_v61, 0.0  ;;  %v1434_v10 = vsel %vm5694_vm1, inf, %v3891_v60  ;;  %v1694_v14 = vsel %vm1523_vm4, %v3893_v61, -inf  ;;  %v1540_v15 = vmin.f32 %v3867_v36, %v1433_v6 }
 0x21a   : > { %v1438_v12 = vsel %vm5692_vm0, inf, %v3893_v61  ;;  %v3921_v16 = vmin.f32 %v1536_v58, %v1434_v10  ;;  %vm5693_vm15 = vcmp.eq.f32.partialorder %v3900_v3, 0.0  ;;  %v1695_v20 = vmax.f32 %v3907_v7, %v1694_v14 }
 0x21b   : > { %v3924_v17 = vsel %vm1523_vm4, %v1438_v12, inf  ;;  %v801_v18 = vpop.f32.mrb[16].mxu1  ;;  %v1074_v19 = vpop.f32.mrb[20].mxu0  ;;  %v1436_v22 = vsel %vm5693_vm15, inf, %v3900_v3  ;;  %v3931_v23 = vmax.f32 %v797_v4, 0.0  ;;  %v3933_v24 = vmax.f32 %v1069_v63, 0.0 }
 0x21c   : > { %v803_v27 = vpop.f32.mrb[17].mxu1  ;;  %v2940_v28 = vpop.f32.mrb[21].mxu0  ;;  %v1547_v31 = vmin.f32 %v3921_v16, %v3924_v17  ;;  %v1692_v32 = vmax.f32 %v1687_v47, %v3900_v3  ;;  %v3938_v36 = vmax.f32 %v801_v18, 0.0  ;;  %v1544_v42 = vmin.f32 %v1539_v53, %v1436_v22 }
 0x21d   : > { %5949 = vst [vmem:[#allocation10_spill] sm:$0xff] %v3933_v24  ;;  %v3940_v39 = vmax.f32 %v803_v27, 0.0  ;;  %vm5698_vm0 = vcmp.eq.f32.partialorder %v3931_v23, 0.0  ;;  %v3944_v40 = vmax.f32 %v1688_v9, %v3931_v23  ;;  %vm5695_vm15 = vcmp.eq.f32.partialorder %v3933_v24, 0.0 }
 0x21e   : > { %5950 = vst [vmem:[#allocation11_spill] sm:$0xff] %v3938_v36  ;;  %v1698_v41 = vsel %vm1523_vm4, %v3933_v24, -inf  ;;  %v1437_v43 = vsel %vm5698_vm0, inf, %v3931_v23  ;;  %v1441_v44 = vsel %vm5695_vm15, inf, %v3933_v24  ;;  %vm5696_vm1 = vcmp.eq.f32.partialorder %v3938_v36, 0.0 }
 0x21f   : > { %5951 = vst [vmem:[#allocation12_spill] sm:$0xff] %v3940_v39  ;;  %v807_v45 = vpop.f32.mrb[18].mxu1  ;;  %v1079_v46 = vpop.f32.mrb[22].mxu0  ;;  %v1545_v47 = vmin.f32 %v1540_v15, %v1437_v43  ;;  %v1550_v48 = vsel %vm1523_vm4, %v1441_v44, inf  ;;  %v1439_v50 = vsel %vm5696_vm1, inf, %v3938_v36  ;;  %v1696_v52 = vmax.f32 %v3897_v1, %v3938_v36 }
 0x220   : > { %v809_v53 = vpop.f32.mrb[19].mxu1  ;;  %v2943_v54 = vpop.f32.mrb[23].mxu0  ;;  %v1699_v56 = vmax.f32 %v3944_v40, %v1698_v41  ;;  %vm5697_vm15 = vcmp.eq.f32.partialorder %v3940_v39, 0.0  ;;  %v1697_v58 = vmax.f32 %v1692_v32, %v3940_v39  ;;  %v3965_v59 = vmax.f32 %v1074_v19, 0.0 }
 0x221   : > { %v1548_v62 = vmin.f32 %v3895_v0, %v1439_v50  ;;  %v1440_v63 = vsel %vm5697_vm15, inf, %v3940_v39  ;;  %v3971_v4 = vmax.f32 %v807_v45, 0.0  ;;  %v3973_v5 = vmax.f32 %v809_v53, 0.0 }
 0x222   : > { %5952 = vst [vmem:[#allocation13_spill] sm:$0xff] %v3965_v59  ;;  %v1549_v1 = vmin.f32 %v1544_v42, %v1440_v63  ;;  %vm5699_vm1 = vcmp.eq.f32.partialorder %v3965_v59, 0.0  ;;  %v1702_v6 = vsel %vm1523_vm4, %v3965_v59, -inf  ;;  %v3978_v7 = vmax.f32 %v1079_v46, 0.0 }
 0x223   : > { %5953 = vst [vmem:[#allocation14_spill] sm:$0xff] %v3971_v4  ;;  %5954 = vst [vmem:[#allocation15_spill] sm:$0xff] %v3973_v5  ;;  %v813_v9 = vpop.f32.mrb[20].mxu1  ;;  %v1084_v10 = vpop.f32.mrb[24].mxu0  ;;  %v1551_v12 = vmin.f32 %v1545_v47, %v1550_v48  ;;  %v1444_v0 = vsel %vm5699_vm1, inf, %v3965_v59  ;;  %v3983_v14 = vmax.f32 %v1697_v58, %v1702_v6  ;;  %vm5701_vm15 = vcmp.eq.f32.partialorder %v3971_v4, 0.0 }
 0x224   : > { %5955 = vst [vmem:[#allocation16_spill] sm:$0xff] %v3978_v7  ;;  %v815_v15 = vpop.f32.mrb[21].mxu1  ;;  %v2946_v16 = vpop.f32.mrb[25].mxu0  ;;  %v1554_v17 = vsel %vm1523_vm4, %v1444_v0, inf  ;;  %v1442_v18 = vsel %vm5701_vm15, inf, %v3971_v4  ;;  %vm5702_vm0 = vcmp.eq.f32.partialorder %v3973_v5, 0.0  ;;  %v1701_v19 = vmax.f32 %v1696_v52, %v3973_v5 }
 0x225   : > { %v3992_v22 = vmin.f32 %v1549_v1, %v1554_v17  ;;  %v1700_v27 = vmax.f32 %v1695_v20, %v3971_v4  ;;  %v1443_v28 = vsel %vm5702_vm0, inf, %v3973_v5  ;;  %vm5700_vm1 = vcmp.eq.f32.partialorder %v3978_v7, 0.0 }
 0x226   : > { %v1553_v32 = vmin.f32 %v1548_v62, %v1443_v28  ;;  %v1447_v40 = vsel %vm5700_vm1, inf, %v3978_v7  ;;  %v1706_v41 = vsel %vm1523_vm4, %v3978_v7, -inf  ;;  %v4004_v42 = vmax.f32 %v813_v9, 0.0 }
 0x227   : > { %v819_v43 = vpop.f32.mrb[22].mxu1  ;;  %v1089_v44 = vpop.f32.mrb[26].mxu0  ;;  %v1552_v45 = vmin.f32 %v1547_v31, %v1442_v18  ;;  %v1558_v20 = vsel %vm1523_vm4, %v1447_v40, inf  ;;  %v4007_v46 = vmax.f32 %v815_v15, 0.0  ;;  %v4009_v47 = vmax.f32 %v1084_v10, 0.0 }
 0x228   : > { %5956 = vst [vmem:[#allocation17_spill] sm:$0xff] %v4004_v42  ;;  %v821_v48 = vpop.f32.mrb[23].mxu1  ;;  %v2949_v50 = vpop.f32.mrb[27].mxu0  ;;  %v1559_v52 = vmin.f32 %v1553_v32, %v1558_v20  ;;  %v1707_v53 = vmax.f32 %v1701_v19, %v1706_v41  ;;  %vm5703_vm1 = vcmp.eq.f32.partialorder %v4004_v42, 0.0  ;;  %v4012_v54 = vmax.f32 %v819_v43, 0.0 }
 0x229   : > { %5957 = vst [vmem:[#allocation18_spill] sm:$0xff] %v4007_v46  ;;  %5958 = vst [vmem:[#allocation19_spill] sm:$0xff] %v4009_v47  ;;  %v1445_v58 = vsel %vm5703_vm1, inf, %v4004_v42  ;;  %vm5705_vm15 = vcmp.eq.f32.partialorder %v4007_v46, 0.0  ;;  %v1705_v31 = vmax.f32 %v1700_v27, %v4007_v46  ;;  %vm5704_vm0 = vcmp.eq.f32.partialorder %v4009_v47, 0.0 }
 0x22a   : > { %5959 = vst [vmem:[#allocation20_spill] sm:$0xff] %v4012_v54  ;;  %v1704_v62 = vmax.f32 %v1699_v56, %v4004_v42  ;;  %v1446_v63 = vsel %vm5705_vm15, inf, %v4007_v46  ;;  %v1450_v1 = vsel %vm5704_vm0, inf, %v4009_v47  ;;  %v1710_v6 = vsel %vm1523_vm4, %v4009_v47, -inf }
 0x22b   : > { %v825_v9 = vpop.f32.mrb[24].mxu1  ;;  %v1094_v10 = vpop.f32.mrb[28].mxu0  ;;  %v1556_v0 = vmin.f32 %v1551_v12, %v1445_v58  ;;  %v1557_v15 = vmin.f32 %v1552_v45, %v1446_v63  ;;  %v1562_v16 = vsel %vm1523_vm4, %v1450_v1, inf  ;;  %vm5706_vm1 = vcmp.eq.f32.partialorder %v4012_v54, 0.0 }
 0x22c   : > { %v827_v56 = vpop.f32.mrb[25].mxu1  ;;  %v2952_v17 = vpop.f32.mrb[29].mxu0  ;;  %v4031_v18 = vmax.f32 %v1705_v31, %v1710_v6  ;;  %v1448_v19 = vsel %vm5706_vm1, inf, %v4012_v54  ;;  %v4036_v27 = vmax.f32 %v821_v48, 0.0  ;;  %v4038_v28 = vmax.f32 %v1089_v44, 0.0 }
 0x22d   : > { %v4040_v32 = vmin.f32 %v1557_v15, %v1562_v16  ;;  %v1708_v12 = vmax.f32 %v3983_v14, %v4012_v54  ;;  %v4044_v40 = vmax.f32 %v825_v9, 0.0  ;;  %v4046_v41 = vmax.f32 %v827_v56, 0.0 }
 0x22e   : > { %5960 = vst [vmem:[#allocation21_spill] sm:$0xff] %v4036_v27  ;;  %5961 = vst [vmem:[#allocation22_spill] sm:$0xff] %v4038_v28  ;;  %vm5707_vm0 = vcmp.eq.f32.partialorder %v4036_v27, 0.0  ;;  %v1709_v43 = vmax.f32 %v1704_v62, %v4036_v27  ;;  %vm5708_vm15 = vcmp.eq.f32.partialorder %v4038_v28, 0.0  ;;  %v1714_v45 = vsel %vm1523_vm4, %v4038_v28, -inf }
 0x22f   : > { %5962 = vst [vmem:[#allocation23_spill] sm:$0xff] %v4044_v40  ;;  %5963 = vst [vmem:[#allocation24_spill] sm:$0xff] %v4046_v41  ;;  %v831_v44 = vpop.f32.mrb[26].mxu1  ;;  %v1099_v20 = vpop.f32.mrb[30].mxu0  ;;  %v1560_v48 = vmin.f32 %v3992_v22, %v1448_v19  ;;  %v1449_v14 = vsel %vm5707_vm0, inf, %v4036_v27  ;;  %v1453_v50 = vsel %vm5708_vm15, inf, %v4038_v28  ;;  %v1712_v22 = vmax.f32 %v1707_v53, %v4044_v40 }
 0x230   : > { %vm5709_vm1 = vcmp.eq.f32.partialorder %v4044_v40, 0.0  ;;  %v833_v58 = vpop.f32.mrb[27].mxu1  ;;  %v2955_v31 = vpop.f32.mrb[31].mxu0  ;;  %v1561_v62 = vmin.f32 %v1556_v0, %v1449_v14  ;;  %v1566_v63 = vsel %vm1523_vm4, %v1453_v50, inf  ;;  %v4066_v6 = vmax.f32 %v1709_v43, %v1714_v45 }
 0x231   : > { %v1451_v1 = vsel %vm5709_vm1, inf, %v4044_v40  ;;  %vm5710_vm0 = vcmp.eq.f32.partialorder %v4046_v41, 0.0  ;;  %v4070_v9 = vmax.f32 %v1708_v12, %v4046_v41  ;;  %v4072_v15 = vmax.f32 %v1094_v10, 0.0 }
 0x232   : > { %v1564_v16 = vmin.f32 %v1559_v52, %v1451_v1  ;;  %v1452_v0 = vsel %vm5710_vm0, inf, %v4046_v41  ;;  %v4077_v56 = vmax.f32 %v831_v44, 0.0  ;;  %v4079_v17 = vmax.f32 %v833_v58, 0.0 }
 0x233   : > { %5964 = vst [vmem:[#allocation25_spill] sm:$0xff] %v4072_v15  ;;  %v837_v19 = vpop.f32.mrb[28].mxu1  ;;  %v1104_v53 = vpop.f32.mrb[32].mxu0  ;;  %v4081_v43 = vmin.f32 %v1560_v48, %v1452_v0  ;;  %vm5711_vm15 = vcmp.eq.f32.partialorder %v4072_v15, 0.0  ;;  %v1718_v12 = vsel %vm1523_vm4, %v4072_v15, -inf  ;;  %v4086_v10 = vmax.f32 %v1099_v20, 0.0 }
 0x234   : > { %5965 = vst [vmem:[#allocation26_spill] sm:$0xff] %v4077_v56  ;;  %5966 = vst [vmem:[#allocation27_spill] sm:$0xff] %v4079_v17  ;;  %v839_v52 = vpop.f32.mrb[29].mxu1  ;;  %v2958_v45 = vpop.f32.mrb[33].mxu0  ;;  %v4088_v14 = vmin.f32 %v1561_v62, %v1566_v63  ;;  %v1456_v44 = vsel %vm5711_vm15, inf, %v4072_v15  ;;  %v1719_v50 = vmax.f32 %v4070_v9, %v1718_v12  ;;  %vm5719_vm1 = vcmp.eq.f32.partialorder %v4077_v56, 0.0 }
 0x235   : > { %5967 = vst [vmem:[#allocation28_spill] sm:$0xff] %v4086_v10  ;;  %v1570_v48 = vsel %vm1523_vm4, %v1456_v44, inf  ;;  %v1454_v58 = vsel %vm5719_vm1, inf, %v4077_v56  ;;  %vm5720_vm0 = vcmp.eq.f32.partialorder %v4079_v17, 0.0  ;;  %v1717_v20 = vmax.f32 %v1712_v22, %v4079_v17 }
 0x236   : > { %v1571_v31 = vmin.f32 %v4081_v43, %v1570_v48  ;;  %v1716_v62 = vmax.f32 %v4031_v18, %v4077_v56  ;;  %v1455_v63 = vsel %vm5720_vm0, inf, %v4079_v17  ;;  %vm5716_vm15 = vcmp.eq.f32.partialorder %v4086_v10, 0.0 }
 0x237   : > { %v843_v1 = vpop.f32.mrb[30].mxu1  ;;  %v1109_v9 = vpop.f32.mrb[34].mxu0  ;;  %v1569_v0 = vmin.f32 %v1564_v16, %v1455_v63  ;;  %v1459_v12 = vsel %vm5716_vm15, inf, %v4086_v10  ;;  %v1722_v22 = vsel %vm1523_vm4, %v4086_v10, -inf  ;;  %v4113_v43 = vmax.f32 %v837_v19, 0.0 }
 0x238   : > { %v845_v45 = vpop.f32.mrb[31].mxu1  ;;  %v2961_v18 = vpop.f32.mrb[35].mxu0  ;;  %v1568_v44 = vmin.f32 %v4040_v32, %v1454_v58  ;;  %v1574_v48 = vsel %vm1523_vm4, %v1459_v12, inf  ;;  %v4117_v13 = vmax.f32 %v839_v52, 0.0  ;;  %v4119_v15 = vmax.f32 %v1104_v53, 0.0 }
 0x239   : > { %5968 = vst [vmem:[#allocation29_spill] sm:$0xff] %v4113_v43  ;;  %v4121_v16 = vmin.f32 %v1569_v0, %v1574_v48  ;;  %v4123_v63 = vmax.f32 %v1717_v20, %v1722_v22  ;;  %vm5721_vm15 = vcmp.eq.f32.partialorder %v4113_v43, 0.0  ;;  %v4126_v17 = vmax.f32 %v843_v1, 0.0 }
 0x23a   : > { %5969 = vst [vmem:[#allocation30_spill] sm:$0xff] %v4117_v13  ;;  %5970 = vst [vmem:[#allocation31_spill] sm:$0xff] %v4119_v15  ;;  %v1457_v19 = vsel %vm5721_vm15, inf, %v4113_v43  ;;  %vm5730_vm1 = vcmp.eq.f32.partialorder %v4117_v13, 0.0  ;;  %v4133_v32 = vmax.f32 %v1716_v62, %v4117_v13  ;;  %vm5728_vm0 = vcmp.eq.f32.partialorder %v4119_v15, 0.0 }
 0x23b   : > { %5971 = vst [vmem:[#allocation32_spill] sm:$0xff] %v4126_v17  ;;  %v849_v53 = vpop.f32.mrb[32].mxu1  ;;  %v1114_v52 = vpop.f32.mrb[36].mxu0  ;;  %v1720_v58 = vmax.f32 %v4066_v6, %v4113_v43  ;;  %v1458_v20 = vsel %vm5730_vm1, inf, %v4117_v13  ;;  %v1462_v1 = vsel %vm5728_vm0, inf, %v4119_v15  ;;  %v1726_v0 = vsel %vm1523_vm4, %v4119_v15, -inf }
 0x23c   : > { %v851_v62 = vpop.f32.mrb[33].mxu1  ;;  %v2964_v12 = vpop.f32.mrb[37].mxu0  ;;  %v1572_v22 = vmin.f32 %v4088_v14, %v1457_v19  ;;  %v4147_v18 = vmin.f32 %v1568_v44, %v1458_v20  ;;  %v4150_v48 = vsel %vm1523_vm4, %v1462_v1, inf  ;;  %vm5729_vm15 = vcmp.eq.f32.partialorder %v4126_v17, 0.0 }
 0x23d   : > { %v1727_v6 = vmax.f32 %v4133_v32, %v1726_v0  ;;  %v1460_v10 = vsel %vm5729_vm15, inf, %v4126_v17  ;;  %v4157_v13 = vmax.f32 %v845_v45, 0.0  ;;  %v4159_v15 = vmax.f32 %v1109_v9, 0.0 }
 0x23e   : > { %v1579_v14 = vmin.f32 %v4147_v18, %v4150_v48  ;;  %v1724_v44 = vmax.f32 %v1719_v50, %v4126_v17  ;;  %v4164_v19 = vmax.f32 %v849_v53, 0.0  ;;  %v4166_v20 = vmax.f32 %v851_v62, 0.0 }
 0x23f   : > { %5972 = vst [vmem:[#allocation33_spill] sm:$0xff] %v4157_v13  ;;  %5973 = vst [vmem:[#allocation34_spill] sm:$0xff] %v4159_v15  ;;  %v855_v1 = vpop.f32.mrb[34].mxu1  ;;  %v1119_v12 = vpop.f32.mrb[38].mxu0  ;;  %vm5731_vm0 = vcmp.eq.f32.partialorder %v4157_v13, 0.0  ;;  %v4170_v32 = vmax.f32 %v1720_v58, %v4157_v13  ;;  %vm5740_vm15 = vcmp.eq.f32.partialorder %v4159_v15, 0.0  ;;  %v1576_v50 = vmin.f32 %v1571_v31, %v1460_v10 }
 0x240   : > { %5974 = vst [vmem:[#allocation35_spill] sm:$0xff] %v4164_v19  ;;  %5975 = vst [vmem:[#allocation36_spill] sm:$0xff] %v4166_v20  ;;  %v4175_v9 = vsel %vm1523_vm4, %v4159_v15, -inf  ;;  %v857_v45 = vpop.f32.mrb[35].mxu1  ;;  %v2967_v0 = vpop.f32.mrb[39].mxu0  ;;  %v1461_v53 = vsel %vm5731_vm0, inf, %v4157_v13  ;;  %v1728_v10 = vmax.f32 %v4123_v63, %v4164_v19 }
 0x241   : > { %v1465_v62 = vsel %vm5740_vm15, inf, %v4159_v15  ;;  %vm5743_vm1 = vcmp.eq.f32.partialorder %v4164_v19, 0.0  ;;  %v1577_v58 = vmin.f32 %v1572_v22, %v1461_v53  ;;  %v1731_v31 = vmax.f32 %v4170_v32, %v4175_v9 }
 0x242   : > { %v1582_v18 = vsel %vm1523_vm4, %v1465_v62, inf  ;;  %v1463_v48 = vsel %vm5743_vm1, inf, %v4164_v19  ;;  %vm5744_vm0 = vcmp.eq.f32.partialorder %v4166_v20, 0.0  ;;  %v1729_v0 = vmax.f32 %v1724_v44, %v4166_v20 }
 0x243   : > { %v4194_v15 = vmax.f32 %v1114_v52, 0.0  ;;  %v861_v13 = vpop.f32.mrb[36].mxu1  ;;  %v1124_v22 = vpop.f32.mrb[40].mxu0  ;;  %v1580_v53 = vmin.f32 %v4121_v16, %v1463_v48  ;;  %v1464_v62 = vsel %vm5744_vm0, inf, %v4166_v20  ;;  %v4200_v17 = vmax.f32 %v855_v1, 0.0 }
 0x244   : > { %v4202_v63 = vmax.f32 %v857_v45, 0.0  ;;  %v863_v19 = vpop.f32.mrb[37].mxu1  ;;  %v2970_v32 = vpop.f32.mrb[41].mxu0  ;;  %v1581_v9 = vmin.f32 %v1576_v50, %v1464_v62  ;;  %v4207_v44 = vmax.f32 %v1119_v12, 0.0  ;;  %v1583_v43 = vmin.f32 %v1577_v58, %v1582_v18 }
 0x245   : > { %5976 = vst [vmem:[#allocation37_spill] sm:$0xff] %v4194_v15  ;;  %5977 = vst [vmem:[#allocation38_spill] sm:$0xff] %v4200_v17  ;;  %vm1363_vm15 = vcmp.eq.f32.partialorder %v4194_v15, 0.0  ;;  %v1734_v52 = vsel %vm1523_vm4, %v4194_v15, -inf  ;;  %vm5756_vm1 = vcmp.eq.f32.partialorder %v4200_v17, 0.0  ;;  %v1732_v62 = vmax.f32 %v1727_v6, %v4200_v17 }
 0x246   : > { %5978 = vst [vmem:[#allocation39_spill] sm:$0xff] %v4202_v63  ;;  %5979 = vst [vmem:[#allocation40_spill] sm:$0xff] %v4207_v44  ;;  %v1468_v16 = vsel %vm1363_vm15, inf, %v4194_v15  ;;  %v4212_v48 = vmax.f32 %v1729_v0, %v1734_v52  ;;  %v1466_v45 = vsel %vm5756_vm1, inf, %v4200_v17  ;;  %vm5757_vm0 = vcmp.eq.f32.partialorder %v4202_v63, 0.0 }
 0x247   : > { %v1586_v1 = vsel %vm1523_vm4, %v1468_v16, inf  ;;  %v1733_v12 = vmax.f32 %v1728_v10, %v4202_v63  ;;  %v867_v50 = vpop.f32.mrb[38].mxu1  ;;  %v1129_v58 = vpop.f32.mrb[42].mxu0  ;;  %v1467_v0 = vsel %vm5757_vm0, inf, %v4202_v63  ;;  %vm1366_vm11 = vcmp.eq.f32.partialorder %v4207_v44, 0.0 }
 0x248   : > { %v4221_v18 = vmin.f32 %v1581_v9, %v1586_v1  ;;  %v869_v32 = vpop.f32.mrb[39].mxu1  ;;  %v2973_v52 = vpop.f32.mrb[43].mxu0  ;;  %v1585_v16 = vmin.f32 %v1580_v53, %v1467_v0  ;;  %v1471_v15 = vsel %vm1366_vm11, inf, %v4207_v44  ;;  %v1738_v10 = vsel %vm1523_vm4, %v4207_v44, -inf }
 0x249   : > { %v4233_v9 = vmax.f32 %v861_v13, 0.0  ;;  %v1584_v1 = vmin.f32 %v1579_v14, %v1466_v45  ;;  %v1590_v6 = vsel %vm1523_vm4, %v1471_v15, inf  ;;  %v4236_v17 = vmax.f32 %v863_v19, 0.0 }
 0x24a   : > { %v4238_v63 = vmax.f32 %v1124_v22, 0.0  ;;  %v1591_v20 = vmin.f32 %v1585_v16, %v1590_v6  ;;  %v1739_v56 = vmax.f32 %v1733_v12, %v1738_v10  ;;  %v4241_v53 = vmax.f32 %v867_v50, 0.0 }
 0x24b   : > { %5980 = vst [vmem:[#allocation41_spill] sm:$0xff] %v4233_v9  ;;  %5981 = vst [vmem:[#allocation42_spill] sm:$0xff] %v4236_v17  ;;  %vm5759_vm1 = vcmp.eq.f32.partialorder %v4233_v9, 0.0  ;;  %v873_v0 = vpop.f32.mrb[40].mxu1  ;;  %v1134_v52 = vpop.f32.mrb[44].mxu0  ;;  %vm5768_vm0 = vcmp.eq.f32.partialorder %v4236_v17, 0.0  ;;  %v1737_v15 = vmax.f32 %v1732_v62, %v4236_v17  ;;  %v1736_v22 = vmax.f32 %v1731_v31, %v4233_v9 }
 0x24c   : > { %5982 = vst [vmem:[#allocation43_spill] sm:$0xff] %v4238_v63  ;;  %5983 = vst [vmem:[#allocation44_spill] sm:$0xff] %v4241_v53  ;;  %v1469_v13 = vsel %vm5759_vm1, inf, %v4233_v9  ;;  %vm5904_vm7 = vcmp.eq.f32.partialorder %v4238_v63, 0.0  ;;  %v875_v14 = vpop.f32.mrb[41].mxu1  ;;  %v2976_v19 = vpop.f32.mrb[45].mxu0 }
 0x24d   : > { %v1470_v45 = vsel %vm5768_vm0, inf, %v4236_v17  ;;  %v1474_v12 = vsel %vm5904_vm7, inf, %v4238_v63  ;;  %v1742_v50 = vsel %vm1523_vm4, %v4238_v63, -inf  ;;  %v1588_v16 = vmin.f32 %v1583_v43, %v1469_v13 }
 0x24e   : > { %v1589_v10 = vmin.f32 %v1584_v1, %v1470_v45  ;;  %v1594_v62 = vsel %vm1523_vm4, %v1474_v12, inf  ;;  %vm5769_vm1 = vcmp.eq.f32.partialorder %v4241_v53, 0.0  ;;  %v4260_v6 = vmax.f32 %v1737_v15, %v1742_v50 }
 0x24f   : > { %v1472_v31 = vsel %vm5769_vm1, inf, %v4241_v53  ;;  %v4265_v19 = vmax.f32 %v869_v32, 0.0  ;;  %v4267_v44 = vmax.f32 %v1129_v58, 0.0  ;;  %v879_v17 = vpop.f32.mrb[42].mxu1  ;;  %v1139_v9 = vpop.f32.mrb[46].mxu0  ;;  %v1740_v43 = vmax.f32 %v4212_v48, %v4241_v53 }
 0x250   : > { %v4269_v28 = vmin.f32 %v1589_v10, %v1594_v62  ;;  %v4273_v1 = vmax.f32 %v873_v0, 0.0  ;;  %v4275_v13 = vmax.f32 %v875_v14, 0.0  ;;  %v881_v15 = vpop.f32.mrb[43].mxu1  ;;  %v2979_v45 = vpop.f32.mrb[47].mxu0  ;;  %v1592_v12 = vmin.f32 %v4221_v18, %v1472_v31 }
 0x251   : > { %5984 = vst [vmem:[#allocation45_spill] sm:$0xff] %v4265_v19  ;;  %5985 = vst [vmem:[#allocation46_spill] sm:$0xff] %v4267_v44  ;;  %vm5771_vm0 = vcmp.eq.f32.partialorder %v4265_v19, 0.0  ;;  %v1741_v32 = vmax.f32 %v1736_v22, %v4265_v19  ;;  %vm5892_vm1 = vcmp.eq.f32.partialorder %v4267_v44, 0.0  ;;  %v1746_v58 = vsel %vm1523_vm4, %v4267_v44, -inf }
 0x252   : > { %5986 = vst [vmem:[#allocation47_spill] sm:$0xff] %v4273_v1  ;;  %5987 = vst [vmem:[#allocation48_spill] sm:$0xff] %v4275_v13  ;;  %v1473_v48 = vsel %vm5771_vm0, inf, %v4265_v19  ;;  %v1477_v0 = vsel %vm5892_vm1, inf, %v4267_v44  ;;  %vm5778_vm13 = vcmp.eq.f32.partialorder %v4273_v1, 0.0  ;;  %v1744_v10 = vmax.f32 %v1739_v56, %v4273_v1 }
 0x253   : > { %v1593_v14 = vmin.f32 %v1588_v16, %v1473_v48  ;;  %v1598_v22 = vsel %vm1523_vm4, %v1477_v0, inf  ;;  %v1475_v50 = vsel %vm5778_vm13, inf, %v4273_v1  ;;  %v885_v18 = vpop.f32.mrb[44].mxu1  ;;  %v1144_v62 = vpop.f32.mrb[48].mxu0  ;;  %v4295_v31 = vmax.f32 %v1741_v32, %v1746_v58 }
 0x254   : > { %vm5779_vm0 = vcmp.eq.f32.partialorder %v4275_v13, 0.0  ;;  %v4299_v45 = vmax.f32 %v1740_v43, %v4275_v13  ;;  %v4301_v44 = vmax.f32 %v1134_v52, 0.0  ;;  %v887_v16 = vpop.f32.mrb[45].mxu1  ;;  %v2982_v48 = vpop.f32.mrb[49].mxu0  ;;  %v1596_v0 = vmin.f32 %v1591_v20, %v1475_v50 }
 0x255   : > { %v1476_v63 = vsel %vm5779_vm0, inf, %v4275_v13  ;;  %v4306_v19 = vmax.f32 %v879_v17, 0.0  ;;  %v4308_v56 = vmax.f32 %v881_v15, 0.0  ;;  %v4315_v52 = vmax.f32 %v1139_v9, 0.0 }
 0x256   : > { %5988 = vst [vmem:[#allocation49_spill] sm:$0xff] %v4301_v44  ;;  %v4310_v32 = vmin.f32 %v1592_v12, %v1476_v63  ;;  %vm5781_vm13 = vcmp.eq.f32.partialorder %v4301_v44, 0.0  ;;  %v1750_v43 = vsel %vm1523_vm4, %v4301_v44, -inf  ;;  %v4317_v58 = vmin.f32 %v1593_v14, %v1598_v22 }
 0x257   : > { %5989 = vst [vmem:[#allocation50_spill] sm:$0xff] %v4306_v19  ;;  %5990 = vst [vmem:[#allocation51_spill] sm:$0xff] %v4308_v56  ;;  %v1480_v20 = vsel %vm5781_vm13, inf, %v4301_v44  ;;  %v1751_v17 = vmax.f32 %v4299_v45, %v1750_v43  ;;  %vm5790_vm0 = vcmp.eq.f32.partialorder %v4306_v19, 0.0  ;;  %v891_v15 = vpop.f32.mrb[46].mxu1  ;;  %v1149_v63 = vpop.f32.mrb[50].mxu0  ;;  %v1749_v9 = vmax.f32 %v1744_v10, %v4308_v56 }
 0x258   : > { %5991 = vst [vmem:[#allocation52_spill] sm:$0xff] %v4315_v52  ;;  %v1602_v12 = vsel %vm1523_vm4, %v1480_v20, inf  ;;  %v1478_v50 = vsel %vm5790_vm0, inf, %v4306_v19  ;;  %vm5795_vm10 = vcmp.eq.f32.partialorder %v4308_v56, 0.0  ;;  %v893_v14 = vpop.f32.mrb[47].mxu1  ;;  %v2985_v22 = vpop.f32.mrb[51].mxu0  ;;  %v1748_v45 = vmax.f32 %v4260_v6, %v4306_v19 }
 0x259   : > { %v1603_v48 = vmin.f32 %v4310_v32, %v1602_v12  ;;  %v1479_v43 = vsel %vm5795_vm10, inf, %v4308_v56  ;;  %vm5796_vm13 = vcmp.eq.f32.partialorder %v4315_v52, 0.0  ;;  %v1754_v10 = vsel %vm1523_vm4, %v4315_v52, -inf }
 0x25a   : > { %v1601_v20 = vmin.f32 %v1596_v0, %v1479_v43  ;;  %v1483_v44 = vsel %vm5796_vm13, inf, %v4315_v52  ;;  %v4342_v22 = vmax.f32 %v885_v18, 0.0  ;;  %v1600_v32 = vmin.f32 %v4269_v28, %v1478_v50 }
 0x25b   : > { %v1606_v6 = vsel %vm1523_vm4, %v1483_v44, inf  ;;  %v4346_v12 = vmax.f32 %v887_v16, 0.0  ;;  %v4348_v19 = vmax.f32 %v1144_v62, 0.0  ;;  %v897_v56 = vpop.f32.mrb[48].mxu1  ;;  %v1154_v13 = vpop.f32.mrb[52].mxu0  ;;  %v4352_v43 = vmax.f32 %v1749_v9, %v1754_v10 }
 0x25c   : > { %5992 = vst [vmem:[#allocation53_spill] sm:$0xff] %v4342_v22  ;;  %v4350_v0 = vmin.f32 %v1601_v20, %v1606_v6  ;;  %vm5797_vm0 = vcmp.eq.f32.partialorder %v4342_v22, 0.0  ;;  %v4355_v1 = vmax.f32 %v891_v15, 0.0  ;;  %v899_v18 = vpop.f32.mrb[49].mxu1  ;;  %v2988_v52 = vpop.f32.mrb[53].mxu0  ;;  %v1752_v62 = vmax.f32 %v4295_v31, %v4342_v22 }
 0x25d   : > { %5993 = vst [vmem:[#allocation54_spill] sm:$0xff] %v4346_v12  ;;  %5994 = vst [vmem:[#allocation55_spill] sm:$0xff] %v4348_v19  ;;  %v1481_v28 = vsel %vm5797_vm0, inf, %v4342_v22  ;;  %vm5804_vm10 = vcmp.eq.f32.partialorder %v4346_v12, 0.0  ;;  %v4362_v44 = vmax.f32 %v1748_v45, %v4346_v12  ;;  %vm5806_vm13 = vcmp.eq.f32.partialorder %v4348_v19, 0.0 }
 0x25e   : > { %5995 = vst [vmem:[#allocation56_spill] sm:$0xff] %v4355_v1  ;;  %v1482_v16 = vsel %vm5804_vm10, inf, %v4346_v12  ;;  %v1486_v52 = vsel %vm5806_vm13, inf, %v4348_v19  ;;  %v1758_v15 = vsel %vm1523_vm4, %v4348_v19, -inf  ;;  %v1604_v50 = vmin.f32 %v4317_v58, %v1481_v28 }
 0x25f   : > { %v4376_v9 = vmin.f32 %v1600_v32, %v1482_v16  ;;  %v4379_v45 = vsel %vm1523_vm4, %v1486_v52, inf  ;;  %vm5805_vm0 = vcmp.eq.f32.partialorder %v4355_v1, 0.0  ;;  %v903_v31 = vpop.f32.mrb[50].mxu1  ;;  %v1159_v20 = vpop.f32.mrb[54].mxu0  ;;  %v1759_v10 = vmax.f32 %v4362_v44, %v1758_v15 }
 0x260   : > { %v1484_v6 = vsel %vm5805_vm0, inf, %v4355_v1  ;;  %v4386_v12 = vmax.f32 %v893_v14, 0.0  ;;  %v4388_v19 = vmax.f32 %v1149_v63, 0.0  ;;  %v905_v58 = vpop.f32.mrb[51].mxu1  ;;  %v2991_v32 = vpop.f32.mrb[55].mxu0  ;;  %v1756_v16 = vmax.f32 %v1751_v17, %v4355_v1 }
 0x261   : > { %v1611_v28 = vmin.f32 %v4376_v9, %v4379_v45  ;;  %v4393_v52 = vmax.f32 %v897_v56, 0.0  ;;  %v4395_v22 = vmax.f32 %v899_v18, 0.0  ;;  %v1608_v14 = vmin.f32 %v1603_v48, %v1484_v6 }
 0x262   : > { %5996 = vst [vmem:[#allocation57_spill] sm:$0xff] %v4386_v12  ;;  %5997 = vst [vmem:[#allocation58_spill] sm:$0xff] %v4388_v19  ;;  %vm5809_vm10 = vcmp.eq.f32.partialorder %v4386_v12, 0.0  ;;  %v4399_v44 = vmax.f32 %v1752_v62, %v4386_v12  ;;  %vm5818_vm0 = vcmp.eq.f32.partialorder %v4388_v19, 0.0  ;;  %v1762_v63 = vsel %vm1523_vm4, %v4388_v19, -inf }
 0x263   : > { %5998 = vst [vmem:[#allocation59_spill] sm:$0xff] %v4393_v52  ;;  %5999 = vst [vmem:[#allocation60_spill] sm:$0xff] %v4395_v22  ;;  %v1485_v15 = vsel %vm5809_vm10, inf, %v4386_v12  ;;  %v1489_v56 = vsel %vm5818_vm0, inf, %v4388_v19  ;;  %vm5816_vm13 = vcmp.eq.f32.partialorder %v4393_v52, 0.0  ;;  %v909_v17 = vpop.f32.mrb[52].mxu1  ;;  %v1760_v48 = vmax.f32 %v4352_v43, %v4393_v52 }
 0x264   : > { %v1164_v18 = vpop.f32.mrb[56].mxu0  ;;  %v1609_v62 = vmin.f32 %v1604_v50, %v1485_v15  ;;  %v1614_v9 = vsel %vm1523_vm4, %v1489_v56, inf  ;;  %v1487_v45 = vsel %vm5816_vm13, inf, %v4393_v52  ;;  %v911_v6 = vpop.f32.mrb[53].mxu1  ;;  %v1763_v12 = vmax.f32 %v4399_v44, %v1762_v63 }
 0x265   : > { %v2994_v32 = vpop.f32.mrb[57].mxu0  ;;  %vm5817_vm10 = vcmp.eq.f32.partialorder %v4395_v22, 0.0  ;;  %v1761_v19 = vmax.f32 %v1756_v16, %v4395_v22  ;;  %v4420_v1 = vmax.f32 %v1154_v13, 0.0  ;;  %v1612_v50 = vmin.f32 %v4350_v0, %v1487_v45 }
 0x266   : > { %v1488_v15 = vsel %vm5817_vm10, inf, %v4395_v22  ;;  %v4426_v56 = vmax.f32 %v903_v31, 0.0  ;;  %v4428_v53 = vmax.f32 %v905_v58, 0.0  ;;  %v4433_v63 = vmax.f32 %v1159_v20, 0.0 }
 0x267   : > { %6000 = vst [vmem:[#allocation61_spill] sm:$0xff] %v4420_v1  ;;  %v1613_v43 = vmin.f32 %v1608_v14, %v1488_v15  ;;  %vm5819_vm13 = vcmp.eq.f32.partialorder %v4420_v1, 0.0  ;;  %v1766_v44 = vsel %vm1523_vm4, %v4420_v1, -inf  ;;  %v915_v13 = vpop.f32.mrb[54].mxu1  ;;  %v1169_v16 = vpop.f32.mrb[58].mxu0  ;;  %v1615_v32 = vmin.f32 %v1609_v62, %v1614_v9 }
 0x268   : > { %6001 = vst [vmem:[#allocation62_spill] sm:$0xff] %v4426_v56  ;;  %6002 = vst [vmem:[#allocation63_spill] sm:$0xff] %v4428_v53  ;;  %v1492_v0 = vsel %vm5819_vm13, inf, %v4420_v1  ;;  %v4438_v45 = vmax.f32 %v1761_v19, %v1766_v44  ;;  %vm5830_vm10 = vcmp.eq.f32.partialorder %v4426_v56, 0.0  ;;  %v917_v31 = vpop.f32.mrb[55].mxu1  ;;  %v2997_v58 = vpop.f32.mrb[59].mxu0  ;;  %v1765_v62 = vmax.f32 %v1760_v48, %v4428_v53 }
 0x269   : > { %6003 = vst [vmem:[#allocation64_spill] sm:$0xff] %v4433_v63  ;;  %v1618_v14 = vsel %vm1523_vm4, %v1492_v0, inf  ;;  %v1490_v20 = vsel %vm5830_vm10, inf, %v4426_v56  ;;  %vm5833_vm0 = vcmp.eq.f32.partialorder %v4428_v53, 0.0  ;;  %v1764_v15 = vmax.f32 %v1759_v10, %v4426_v56 }
 0x26a   : > { %v4447_v9 = vmin.f32 %v1613_v43, %v1618_v14  ;;  %v1491_v19 = vsel %vm5833_vm0, inf, %v4428_v53  ;;  %vm5834_vm13 = vcmp.eq.f32.partialorder %v4433_v63, 0.0  ;;  %v1770_v58 = vsel %vm1523_vm4, %v4433_v63, -inf }
 0x26b   : > { %v1617_v44 = vmin.f32 %v1612_v50, %v1491_v19  ;;  %v1495_v0 = vsel %vm5834_vm13, inf, %v4433_v63  ;;  %v4459_v1 = vmax.f32 %v909_v17, 0.0  ;;  %v921_v48 = vpop.f32.mrb[56].mxu1  ;;  %v1174_v43 = vpop.f32.mrb[60].mxu0  ;;  %v1616_v14 = vmin.f32 %v1611_v28, %v1490_v20 }
 0x26c   : > { %v1622_v10 = vsel %vm1523_vm4, %v1495_v0, inf  ;;  %v4462_v56 = vmax.f32 %v911_v6, 0.0  ;;  %v4464_v53 = vmax.f32 %v1164_v18, 0.0  ;;  %v923_v22 = vpop.f32.mrb[57].mxu1  ;;  %v3000_v50 = vpop.f32.mrb[61].mxu0  ;;  %v1771_v52 = vmax.f32 %v1765_v62, %v1770_v58 }
 0x26d   : > { %6004 = vst [vmem:[#allocation65_spill] sm:$0xff] %v4459_v1  ;;  %v1623_v19 = vmin.f32 %v1617_v44, %v1622_v10  ;;  %vm5835_vm10 = vcmp.eq.f32.partialorder %v4459_v1, 0.0  ;;  %v4467_v41 = vmax.f32 %v915_v13, 0.0  ;;  %v1768_v18 = vmax.f32 %v1763_v12, %v4459_v1 }
 0x26e   : > { %6005 = vst [vmem:[#allocation66_spill] sm:$0xff] %v4462_v56  ;;  %6006 = vst [vmem:[#allocation67_spill] sm:$0xff] %v4464_v53  ;;  %v1493_v17 = vsel %vm5835_vm10, inf, %v4459_v1  ;;  %vm5844_vm0 = vcmp.eq.f32.partialorder %v4462_v56, 0.0  ;;  %v1769_v28 = vmax.f32 %v1764_v15, %v4462_v56  ;;  %vm5845_vm13 = vcmp.eq.f32.partialorder %v4464_v53, 0.0 }
 0x26f   : > { %6007 = vst [vmem:[#allocation68_spill] sm:$0xff] %v4467_v41  ;;  %v1494_v6 = vsel %vm5844_vm0, inf, %v4462_v56  ;;  %v1498_v13 = vsel %vm5845_vm13, inf, %v4464_v53  ;;  %v1774_v20 = vsel %vm1523_vm4, %v4464_v53, -inf  ;;  %v927_v62 = vpop.f32.mrb[58].mxu1  ;;  %v1179_v44 = vpop.f32.mrb[62].mxu0  ;;  %v1620_v0 = vmin.f32 %v1615_v32, %v1493_v17 }
 0x270   : > { %v1621_v58 = vmin.f32 %v1616_v14, %v1494_v6  ;;  %v1626_v15 = vsel %vm1523_vm4, %v1498_v13, inf  ;;  %vm5846_vm10 = vcmp.eq.f32.partialorder %v4467_v41, 0.0  ;;  %v929_v12 = vpop.f32.mrb[59].mxu1  ;;  %v3003_v10 = vpop.f32.mrb[63].mxu0  ;;  %v4486_v50 = vmax.f32 %v1769_v28, %v1774_v20 }
 0x271   : > { %v1496_v63 = vsel %vm5846_vm10, inf, %v4467_v41  ;;  %v4491_v56 = vmax.f32 %v917_v31, 0.0  ;;  %v4493_v1 = vmax.f32 %v1169_v16, 0.0  ;;  %v1772_v32 = vmax.f32 %v4438_v45, %v4467_v41 }
 0x272   : > { %v4495_v53 = vmin.f32 %v1621_v58, %v1626_v15  ;;  %v4499_v14 = vmax.f32 %v921_v48, 0.0  ;;  %v4501_v17 = vmax.f32 %v923_v22, 0.0  ;;  %v1624_v13 = vmin.f32 %v4447_v9, %v1496_v63 }
 0x273   : > { %6008 = vst [vmem:[#allocation69_spill] sm:$0xff] %v4491_v56  ;;  %6009 = vst [vmem:[#allocation70_spill] sm:$0xff] %v4493_v1  ;;  %vm5847_vm0 = vcmp.eq.f32.partialorder %v4491_v56, 0.0  ;;  %v1773_v28 = vmax.f32 %v1768_v18, %v4491_v56  ;;  %vm5856_vm13 = vcmp.eq.f32.partialorder %v4493_v1, 0.0  ;;  %v1778_v31 = vsel %vm1523_vm4, %v4493_v1, -inf  ;;  %v933_v16 = vpop.f32.mrb[60].mxu1 }
 0x274   : > { %6010 = vst [vmem:[#allocation71_spill] sm:$0xff] %v4499_v14  ;;  %6011 = vst [vmem:[#allocation72_spill] sm:$0xff] %v4501_v17  ;;  %v1184_v6 = vpop.f32.mrb[64].mxu0  ;;  %v1497_v45 = vsel %vm5847_vm0, inf, %v4491_v56  ;;  %v1501_v22 = vsel %vm5856_vm13, inf, %v4493_v1  ;;  %vm5852_vm10 = vcmp.eq.f32.partialorder %v4499_v14, 0.0  ;;  %v1776_v63 = vmax.f32 %v1771_v52, %v4499_v14 }
 0x275   : > { %v935_v48 = vpop.f32.mrb[61].mxu1  ;;  %v3006_v18 = vpop.f32.mrb[65].mxu0  ;;  %v1625_v20 = vmin.f32 %v1620_v0, %v1497_v45  ;;  %v1630_v58 = vsel %vm1523_vm4, %v1501_v22, inf  ;;  %v1499_v15 = vsel %vm5852_vm10, inf, %v4499_v14  ;;  %v4521_v9 = vmax.f32 %v1773_v28, %v1778_v31 }
 0x276   : > { %vm5855_vm0 = vcmp.eq.f32.partialorder %v4501_v17, 0.0  ;;  %v1777_v10 = vmax.f32 %v1772_v32, %v4501_v17  ;;  %v4525_v1 = vmax.f32 %v1174_v43, 0.0  ;;  %v4527_v56 = vmin.f32 %v1623_v19, %v1499_v15 }
 0x277   : > { %v1500_v0 = vsel %vm5855_vm0, inf, %v4501_v17  ;;  %v4532_v45 = vmax.f32 %v927_v62, 0.0  ;;  %v4534_v22 = vmax.f32 %v929_v12, 0.0  ;;  %v939_v18 = vpop.f32.mrb[62].mxu1  ;;  %v1189_v52 = vpop.f32.mrb[66].mxu0  ;;  %v4539_v43 = vmax.f32 %v1179_v44, 0.0 }
 0x278   : > { %6012 = vst [vmem:[#allocation73_spill] sm:$0xff] %v4525_v1  ;;  %v1629_v28 = vmin.f32 %v1624_v13, %v1500_v0  ;;  %vm5857_vm10 = vcmp.eq.f32.partialorder %v4525_v1, 0.0  ;;  %v1782_v32 = vsel %vm1523_vm4, %v4525_v1, -inf  ;;  %v941_v19 = vpop.f32.mrb[63].mxu1  ;;  %v3009_v31 = vpop.f32.mrb[67].mxu0  ;;  %v1631_v15 = vmin.f32 %v1625_v20, %v1630_v58 }
 0x279   : > { %6013 = vst [vmem:[#allocation74_spill] sm:$0xff] %v4532_v45  ;;  %6014 = vst [vmem:[#allocation75_spill] sm:$0xff] %v4534_v22  ;;  %v1504_v62 = vsel %vm5857_vm10, inf, %v4525_v1  ;;  %v1783_v17 = vmax.f32 %v1777_v10, %v1782_v32  ;;  %vm5864_vm0 = vcmp.eq.f32.partialorder %v4532_v45, 0.0  ;;  %vm5867_vm13 = vcmp.eq.f32.partialorder %v4534_v22, 0.0 }
 0x27a   : > { %6015 = vst [vmem:[#allocation76_spill] sm:$0xff] %v4539_v43  ;;  %v1634_v12 = vsel %vm1523_vm4, %v1504_v62, inf  ;;  %v1502_v13 = vsel %vm5864_vm0, inf, %v4532_v45  ;;  %v1781_v44 = vmax.f32 %v1776_v63, %v4534_v22  ;;  %v1780_v20 = vmax.f32 %v4486_v50, %v4532_v45 }
 0x27b   : > { %v1635_v0 = vmin.f32 %v1629_v28, %v1634_v12  ;;  %v4556_v58 = vsel %vm5867_vm13, inf, %v4534_v22  ;;  %vm5868_vm10 = vcmp.eq.f32.partialorder %v4539_v43, 0.0  ;;  %v945_v10 = vpop.f32.mrb[64].mxu1  ;;  %v1194_v32 = vpop.f32.mrb[68].mxu0  ;;  %v1632_v31 = vmin.f32 %v4495_v53, %v1502_v13 }
 0x27c   : > { %v1507_v62 = vsel %vm5868_vm10, inf, %v4539_v43  ;;  %v1786_v63 = vsel %vm1523_vm4, %v4539_v43, -inf  ;;  %v4565_v28 = vmax.f32 %v933_v16, 0.0  ;;  %v947_v50 = vpop.f32.mrb[65].mxu1  ;;  %v3012_v12 = vpop.f32.mrb[69].mxu0  ;;  %v4572_v45 = vmax.f32 %v935_v48, 0.0 }
 0x27d   : > { %v4570_v22 = vsel %vm1523_vm4, %v1507_v62, inf  ;;  %v4574_v53 = vmax.f32 %v1184_v6, 0.0  ;;  %v4576_v13 = vmax.f32 %v1781_v44, %v1786_v63  ;;  %v4579_v14 = vmax.f32 %v939_v18, 0.0 }
 0x27e   : > { %6016 = vst [vmem:[#allocation77_spill] sm:$0xff] %v4565_v28  ;;  %6017 = vst [vmem:[#allocation78_spill] sm:$0xff] %v4572_v45  ;;  %vm5875_vm0 = vcmp.eq.f32.partialorder %v4565_v28, 0.0  ;;  %v4581_v16 = vmax.f32 %v941_v19, 0.0  ;;  %vm5880_vm13 = vcmp.eq.f32.partialorder %v4572_v45, 0.0  ;;  %v1785_v62 = vmax.f32 %v1780_v20, %v4572_v45 }
 0x27f   : > { %6018 = vst [vmem:[#allocation79_spill] sm:$0xff] %v4574_v53  ;;  %6019 = vst [vmem:[#allocation80_spill] sm:$0xff] %v4579_v14  ;;  %v1505_v12 = vsel %vm5875_vm0, inf, %v4565_v28  ;;  %vm5891_vm10 = vcmp.eq.f32.partialorder %v4574_v53, 0.0  ;;  %v951_v6 = vpop.f32.mrb[66].mxu1  ;;  %v1199_v48 = vpop.f32.mrb[70].mxu0  ;;  %v1784_v44 = vmax.f32 %v4521_v9, %v4565_v28  ;;  %v4609_v28 = vmax.f32 %v1783_v17, %v4579_v14 }
 0x280   : > { %6020 = vst [vmem:[#allocation81_spill] sm:$0xff] %v4581_v16  ;;  %v1506_v18 = vsel %vm5880_vm13, inf, %v4572_v45  ;;  %v1510_v19 = vsel %vm5891_vm10, inf, %v4574_v53  ;;  %v1790_v63 = vsel %vm1523_vm4, %v4574_v53, -inf  ;;  %v953_v1 = vpop.f32.mrb[67].mxu1  ;;  %v3015_v20 = vpop.f32.mrb[71].mxu0  ;;  %v1636_v43 = vmin.f32 %v1631_v15, %v1505_v12 }
 0x281   : > { %v4599_v41 = vmin.f32 %v1632_v31, %v1506_v18  ;;  %v4602_v40 = vsel %vm1523_vm4, %v1510_v19, inf  ;;  %vm5889_vm0 = vcmp.eq.f32.partialorder %v4579_v14, 0.0  ;;  %v1791_v9 = vmax.f32 %v1785_v62, %v1790_v63 }
 0x282   : > { %v1508_v45 = vsel %vm5889_vm0, inf, %v4579_v14  ;;  %vm5890_vm13 = vcmp.eq.f32.partialorder %v4581_v16, 0.0  ;;  %v4616_v31 = vmax.f32 %v1784_v44, %v4581_v16  ;;  %v4618_v12 = vmax.f32 %v1189_v52, 0.0 }
 0x283   : > { %v1509_v15 = vsel %vm5890_vm13, inf, %v4581_v16  ;;  %v4620_v18 = vmax.f32 %v945_v10, 0.0  ;;  %v957_v62 = vpop.f32.mrb[68].mxu1  ;;  %v1204_v19 = vpop.f32.mrb[72].mxu0  ;;  %v1640_v63 = vmin.f32 %v1635_v0, %v1508_v45  ;;  %v4622_v20 = vmax.f32 %v947_v50, 0.0 }
 0x284   : > { %6021 = vst [vmem:[#allocation82_spill] sm:$0xff] %v4618_v12  ;;  %v4624_v17 = vmax.f32 %v1194_v32, 0.0  ;;  %v4626_v53 = vmax.f32 %v951_v6, 0.0  ;;  %v959_v14 = vpop.f32.mrb[69].mxu1  ;;  %v3018_v47 = vpop.f32.mrb[73].mxu0  ;;  %v1641_v27 = vmin.f32 %v1636_v43, %v1509_v15  ;;  %vm5893_vm0 = vcmp.eq.f32.partialorder %v4618_v12, 0.0 }
 0x285   : > { %6022 = vst [vmem:[#allocation83_spill] sm:$0xff] %v4620_v18  ;;  %6023 = vst [vmem:[#allocation84_spill] sm:$0xff] %v4622_v20  ;;  %v1794_v52 = vsel %vm1523_vm4, %v4618_v12, -inf  ;;  %vm5902_vm13 = vcmp.eq.f32.partialorder %v4620_v18, 0.0  ;;  %v1513_v45 = vsel %vm5893_vm0, inf, %v4618_v12  ;;  %v1792_v10 = vmax.f32 %v4576_v13, %v4620_v18 }
 0x286   : > { %6024 = vst [vmem:[#allocation85_spill] sm:$0xff] %v4626_v53  ;;  %v1511_v0 = vsel %vm5902_vm13, inf, %v4620_v18  ;;  %vm5903_vm10 = vcmp.eq.f32.partialorder %v4622_v20, 0.0  ;;  %v1793_v43 = vmax.f32 %v4609_v28, %v4622_v20  ;;  %vm1411_vm1 = vcmp.eq.f32.partialorder %v4624_v17, 0.0 }
 0x287   : > { %v1512_v47 = vsel %vm5903_vm10, inf, %v4622_v20  ;;  %vm1409_vm0 = vcmp.eq.f32.partialorder %v4626_v53, 0.0  ;;  %v963_v32 = vpop.f32.mrb[70].mxu1  ;;  %v1796_v50 = vmax.f32 %v1791_v9, %v4626_v53  ;;  %v4649_v6 = vmax.f32 %v953_v1, 0.0 }
 0x288   : > { %v4651_v44 = vmax.f32 %v1199_v48, 0.0  ;;  %v4653_v13 = vmax.f32 %v957_v62, 0.0  ;;  %v965_v15 = vpop.f32.mrb[71].mxu1  ;;  %v4655_v12 = vmax.f32 %v959_v14, 0.0  ;;  %v4657_v18 = vmax.f32 %v1204_v19, 0.0 }
 0x289   : > { %6025 = vst [vmem:[#allocation86_spill] sm:$0xff] %v4649_v6  ;;  %v4659_v16 = vmax.f32 %v963_v32, 0.0  ;;  %v4661_v28 = vmax.f32 %v965_v15, 0.0  ;;  %v1514_v20 = vsel %vm1409_vm0, inf, %v4626_v53  ;;  %vm1410_vm13 = vcmp.eq.f32.partialorder %v4649_v6, 0.0 }
 0x28a   : > { %6026 = vst [vmem:[#allocation87_spill] sm:$0xff] %v4651_v44  ;;  %6027 = vst [vmem:[#allocation88_spill] sm:$0xff] %v4653_v13  ;;  %vm1412_vm10 = vcmp.eq.f32.partialorder %v4653_v13, 0.0  ;;  %vm1414_vm7 = vcmp.eq.f32.partialorder %v4651_v44, 0.0  ;;  %vm1413_vm14 = vcmp.eq.f32.partialorder %v4655_v12, 0.0  ;;  %vm1417_vm3 = vcmp.eq.f32.partialorder %v4657_v18, 0.0 }
 0x28b   : > { %6028 = vst [vmem:[#allocation89_spill] sm:$0xff] %v4655_v12  ;;  %6029 = vst [vmem:[#allocation90_spill] sm:$0xff] %v4657_v18  ;;  %vm1415_vm12 = vcmp.eq.f32.partialorder %v4659_v16, 0.0  ;;  %v1516_v1 = vsel %vm1411_vm1, inf, %v4624_v17  ;;  %vm1416_vm2 = vcmp.eq.f32.partialorder %v4661_v28, 0.0  ;;  %v1515_v14 = vsel %vm1410_vm13, inf, %v4649_v6 }
 0x28c   : > { %6030 = vst [vmem:[#allocation91_spill] sm:$0xff] %v4659_v16  ;;  %6031 = vst [vmem:[#allocation92_spill] sm:$0xff] %v4661_v28  ;;  %v1517_v48 = vsel %vm1412_vm10, inf, %v4653_v13  ;;  %v1519_v9 = vsel %vm1414_vm7, inf, %v4651_v44  ;;  %v1518_v62 = vsel %vm1413_vm14, inf, %v4655_v12  ;;  %v1520_v19 = vsel %vm1415_vm12, inf, %v4659_v16 }
 0x28d   : > { %v1522_v32 = vsel %vm1417_vm3, inf, %v4657_v18  ;;  %v6032_v15 = vmin.f32 %v4527_v56, %v4556_v58  ;;  %v1643_v54 = vmin.f32 %v4599_v41, %v4602_v40  ;;  %v1645_v7 = vmin.f32 %v1640_v63, %v1512_v47 }
 0x28e   : > { %v1646_v46 = vsel %vm1523_vm4, %v1513_v45, inf  ;;  %v1650_v42 = vsel %vm1523_vm4, %v1516_v1, inf  ;;  %v1521_v59 = vsel %vm1416_vm2, inf, %v4661_v28  ;;  %v1654_v24 = vsel %vm1523_vm4, %v1519_v9, inf }
 0x28f   : > { %v1639_v53 = vmin.f32 %v6032_v15, %v4570_v22  ;;  %v1647_v4 = vmin.f32 %v1641_v27, %v1646_v46  ;;  %v1648_v39 = vmin.f32 %v1643_v54, %v1514_v20  ;;  %v1651_v36 = vmin.f32 %v1645_v7, %v1650_v42 }
 0x290   : > { %v1658_v56 = vsel %vm1523_vm4, %v1522_v32, inf  ;;  %v1795_v22 = vmax.f32 %v4616_v31, %v1794_v52  ;;  %v1798_v58 = vsel %vm1523_vm4, %v4624_v17, -inf  ;;  %v1801_v63 = vmax.f32 %v1796_v50, %v4655_v12 }
 0x291   : > { %v1644_v5 = vmin.f32 %v1639_v53, %v1511_v0  ;;  %v1652_v41 = vmin.f32 %v1647_v4, %v1517_v48  ;;  %v1653_v45 = vmin.f32 %v1648_v39, %v1518_v62  ;;  %v1656_v47 = vmin.f32 %v1651_v36, %v1520_v19 }
 0x292   : > { %v1799_v1 = vmax.f32 %v1793_v43, %v1798_v58  ;;  %v1800_v46 = vmax.f32 %v1795_v22, %v4653_v13  ;;  %v1797_v54 = vmax.f32 %v1792_v10, %v4649_v6  ;;  %v1806_v7 = vsel %vm1523_vm4, %v4657_v18, -inf }
 0x293   : > { %v1649_v40 = vmin.f32 %v1644_v5, %v1515_v14  ;;  %v1657_v27 = vmin.f32 %v1652_v41, %v1521_v59  ;;  %v1659_v53 = vmin.f32 %v1653_v45, %v1658_v56  ;;  %v1802_v39 = vsel %vm1523_vm4, %v4651_v44, -inf }
 0x294   : > { %v1804_v4 = vmax.f32 %v1799_v1, %v4659_v16  ;;  %v1805_v5 = vmax.f32 %v1800_v46, %v4661_v28  ;;  %v1807_v20 = vmax.f32 %v1801_v63, %v1806_v7  ;;  %v1803_v0 = vmax.f32 %v1797_v54, %v1802_v39  ;;  %v577_v63 = vld [vmem:[%s5681_s4 + $0x8] sm:$0xff]  ;;  %v6065_v46 = vld [vmem:[#allocation40_spill] sm:$0xff]  ;;  %v6071_v54 = vld [vmem:[#allocation46_spill] sm:$0xff] }
 0x295   : > { %v1655_v42 = vmin.f32 %v1649_v40, %v1654_v24  ;;  %v1661_v31 = vmin.f32 %v1656_v47, %v1657_v27  ;;  %2367 = vmatprep.mubr.f32.mxu0 %v577_v63  ;;  %2213 = vmatprep.mubr.f32.mxu1 %v577_v63  ;;  %v6038_v63 = vld [vmem:[#allocation13_spill] sm:$0xff]  ;;  %v6068_v16 = vld [vmem:[#allocation43_spill] sm:$0xff]  ;;  %v6077_v28 = vld [vmem:[#allocation52_spill] sm:$0xff] }
 0x296   : > { %v1809_v59 = vmax.f32 %v1804_v4, %v1805_v5  ;;  %v1808_v10 = vmax.f32 %v1807_v20, %v1803_v0  ;;  %v6080_v7 = vld [vmem:[#allocation55_spill] sm:$0xff]  ;;  %v6083_v27 = vld [vmem:[#allocation58_spill] sm:$0xff]  ;;  %v6086_v4 = vld [vmem:[#allocation61_spill] sm:$0xff] }
 0x297   : > { %v1660_v36 = vmin.f32 %v1659_v53, %v1655_v42  ;;  %v6062_v53 = vld [vmem:[#allocation37_spill] sm:$0xff] }
 0x298   : > { %v1810_v43 = vmax.f32 %v1808_v10, %v1809_v59  ;;  %v6074_v42 = vld [vmem:[#allocation49_spill] sm:$0xff]  ;;  %v6107_v10 = vld [vmem:[#allocation82_spill] sm:$0xff] }
 0x299   : > { %v1662_v52 = vmin.f32 %v1660_v36, %v1661_v31  ;;  %v6101_v31 = vld [vmem:[#allocation76_spill] sm:$0xff] }
 0x29b   : > { %1663 = vmin.xlane.f32.xlu0 %v1662_v52  ;;  %v6104_v52 = vld [vmem:[#allocation79_spill] sm:$0xff] }
 0x29f   : > { %1811 = vmax.xlane.f32.xlu0 %v1810_v43 }
 0x328   : > { %v1664_v50 = vpop.xlane.xlu0 %1663 }
 0x329   : > { %v1665_v24 = vrot.slane %v1664_v50, 4 }
 0x32b   : > { %v1666_v14 = vmin.f32 %v1664_v50, %v1665_v24  ;;  %v6040_v24 = vld [vmem:[#allocation18_spill] sm:$0xff]  ;;  %v6092_v50 = vld [vmem:[#allocation67_spill] sm:$0xff] }
 0x32c   : > { %v1812_v48 = vpop.xlane.xlu0 %1811 }
 0x32d   : > { %v1667_v9 = vrot.slane %v1666_v14, 2  ;;  %v1813_v62 = vrot.slane %v1812_v48, 4 }
 0x32f   : > { %v1814_v19 = vmax.f32 %v1812_v48, %v1813_v62  ;;  %v1668_v32 = vmin.f32 %v1666_v14, %v1667_v9  ;;  %v6033_v9 = vld [vmem:[#allocation11_spill] sm:$0xff]  ;;  %v6041_v14 = vld [vmem:[#allocation16_spill] sm:$0xff] }
 0x330   : > { %v6089_v62 = vld [vmem:[#allocation64_spill] sm:$0xff] }
 0x331   : > { %v1815_v15 = vrot.slane %v1814_v19, 2  ;;  %v1669_v56 = vrot.slane %v1668_v32, 1 }
 0x333   : > { %v1816_v22 = vmax.f32 %v1814_v19, %v1815_v15  ;;  %v1670_v40 = vmin.f32 %v1668_v32, %v1669_v56  ;;  %v6034_v19 = vld [vmem:[#allocation12_spill] sm:$0xff]  ;;  %v6035_v15 = vld [vmem:[#allocation10_spill] sm:$0xff] }
 0x335   : > { %3170 = vpush %v1670_v40  ;;  %v1817_v41 = vrot.slane %v1816_v22, 1 }
 0x337   : > { %v1818_v58 = vmax.f32 %v1816_v22, %v1817_v41  ;;  %v6036_v22 = vld [vmem:[#allocation14_spill] sm:$0xff]  ;;  %v6037_v41 = vld [vmem:[#allocation15_spill] sm:$0xff] }
 0x339   : > { %3172 = vpush %v1818_v58 }
 0x366   : > { %s3171_s20 = spop %3170 }
 0x36a   : > { %s3173_s21 = spop %3172 }
 0x36b   : > { %s4722_s22 = ssub.f32 %s3173_s21, %s3171_s20  ;;  %v4725_v1 = vstv %s3173_s21  ;;  %s2631_s20 = sshll.u32 %s346_s15, 4  ;;  %s5627_s20 = int_to_ptr.vmem [resolvable:$true] %s2631_s20 }
 0x36c   : > { %v1877_v32 = vsub.f32 %v4725_v1, %v6062_v53  ;;  %v1880_v58 = vsub.f32 %v4725_v1, %v6065_v46  ;;  %v6109_v48 = vsub.f32 %v4725_v1, %v3762_v29  ;;  %v6110_v20 = vsub.f32 %v4725_v1, %v3777_v38  ;;  %s2814_s21 = sshll.u32 %s3387_s1, 8  ;;  %s3248_s30 = scalar_lea.vmem %s5627_s20, 256 }
 0x36d   : > { %v1822_v45 = vstv %s4722_s22  ;;  %p1821_p5 = scmp.gt.f32.partialorder %s4722_s22, 0.0  ;;  %v6111_v5 = vsub.f32 %v4725_v1, %v3758_v25  ;;  %v6117_v53 = vsub.f32 %v4725_v1, %v3807_v55  ;;  %v6118_v25 = vsub.f32 %v4725_v1, %v3833_v8  ;;  %s5632_s24 = scalar_lea.hbm %s5684_s7, %s2814_s21 }
 0x36e   : > { %3231 = vrcp.f32 %v1822_v45  ;;  %v6112_v45 = vsub.f32 %v4725_v1, %v3775_v37  ;;  %p3249_p10 = scmp.ne.s32.totalorder %s5627_s20, %s3248_s30  ;;  %s3320_s1 = smov [#allocation7]  }
 0x36f   : > { %s3252_s9 = sshll.u32 %s3320_s1, 4  ;;  %s3253_s9 = int_to_ptr.vmem [resolvable:$false] %s3252_s9 }
 0x370   : > { %p3250_p12 = pnand %p3249_p10, %p6363_p11  ;;  %s3254_s12 = scalar_lea.vmem %s3253_s9, 512 }
 0x371   : > { %p3255_p0 = scmp.lt.s32.totalorder %s5627_s20, %s3253_s9  ;;  %p3256_p1 = scmp.lt.s32.totalorder %s3254_s12, %s3248_s30 }
 0x372   : > { %p3251_p13 = pneg %p3250_p12 }
 0x373   : > { %p3257_p2 = por %p3256_p1, %p3255_p0 }
 0x375   : > { %p3258_p3 = pnand %p3257_p2, %p3251_p13 }
 0x378   : > { %v3232_v47 = vpop.eup %3231 }
 0x379   : > { %3174 = vpush %v3232_v47  ;;  %v6039_v47 = vld [vmem:[#allocation17_spill] sm:$0xff] }
 0x3aa   : > { %s3175_s23 = spop %3174 }
 0x3ab   : > { %s6370_s23 = smov (!%p1821_p5, %s3175_s23), 0.0 }
 0x3ac   : > { %v4932_v39 = vstv %s6370_s23 }
 0x3ad   : > { %v1934_v43 = vmul.f32 %v4932_v39, %v6109_v48  ;;  %v1937_v36 = vmul.f32 %v4932_v39, %v6110_v20  ;;  %v1983_v40 = vmul.f32 %v4932_v39, %v1877_v32  ;;  %v1986_v13 = vmul.f32 %v4932_v39, %v1880_v58 }
 0x3ae   : > { %v1933_v12 = vmul.f32 %v4932_v39, %v6111_v5  ;;  %v1936_v6 = vmul.f32 %v4932_v39, %v6112_v45  ;;  %v6113_v48 = vsub.f32 %v4725_v1, %v3755_v21  ;;  %v6114_v20 = vsub.f32 %v4725_v1, %v3760_v26 }
 0x3af   : > { %v2039_v58 = vsel %vm1314_vm6, 1.0, %v1934_v43  ;;  %v2042_v5 = vsel %vm1317_vm8, 1.0, %v1937_v36  ;;  %v2088_v56 = vsel %vm1363_vm15, 1.0, %v1983_v40  ;;  %v2091_v45 = vsel %vm1366_vm11, 1.0, %v1986_v13 }
 0x3b0   : > { %v1935_v59 = vmul.f32 %v4932_v39, %v6113_v48  ;;  %v1938_v32 = vmul.f32 %v4932_v39, %v6114_v20  ;;  %v3050_v0 = vpack.c.bf16 %v2042_v5, %v2039_v58  ;;  %v3118_v18 = vpack.c.bf16 %v2091_v45, %v2088_v56 }
 0x3b1   : > { %v2038_v48 = vsel %vm1313_vm5, 1.0, %v1933_v12  ;;  %v2041_v20 = vsel %vm1316_vm9, 1.0, %v1936_v6  ;;  %vm6115_vm6 = vcmp.eq.f32.partialorder %v3755_v21, 0.0  ;;  %vm6116_vm8 = vcmp.eq.f32.partialorder %v3760_v26, 0.0 }
 0x3b2   : > { %v3052_v44 = vpack.c.bf16 %v2041_v20, %v2038_v48  ;;  %v2040_v29 = vsel %vm6115_vm6, 1.0, %v1935_v59  ;;  %v2043_v38 = vsel %vm6116_vm8, 1.0, %v1938_v32  ;;  %v1940_v13 = vmul.f32 %v4932_v39, %v6117_v53  ;;  %3051 = vmatprep.subr.bf16.mxu1 %v3050_v0  ;;  %3119 = vmatprep.subr.bf16.mxu0 %v3118_v18 }
 0x3b3   : > { %v3120_v46 = vpack.c.bf16 %v2043_v38, %v2040_v29  ;;  %v1943_v37 = vmul.f32 %v4932_v39, %v6118_v25  ;;  %v6119_v21 = vsub.f32 %v4725_v1, %v6068_v16  ;;  %vm6120_vm5 = vcmp.eq.f32.partialorder %v3807_v55, 0.0 }
 0x3b4   : > { %3053 = vmatpush1.bf16.msra.mxu1 %v3052_v44  ;;  %v2045_v26 = vsel %vm6120_vm5, 1.0, %v1940_v13  ;;  %v6121_v6 = vsub.f32 %v4725_v1, %v6071_v54  ;;  %v6122_v36 = vsub.f32 %v4725_v1, %v3799_v49  ;;  %v6123_v59 = vsub.f32 %v4725_v1, %v3826_v2 }
 0x3b5   : > { %v1989_v12 = vmul.f32 %v4932_v39, %v6119_v21  ;;  %3121 = vmatpush3.bf16.msra.mxu0 %v3120_v46  ;;  %vm6124_vm9 = vcmp.eq.f32.partialorder %v3833_v8, 0.0  ;;  %vm6125_vm11 = vcmp.eq.f32.partialorder %v6068_v16, 0.0  ;;  %v6126_v56 = vsub.f32 %v4725_v1, %v3773_v35 }
 0x3b6   : > { %v1992_v18 = vmul.f32 %v4932_v39, %v6121_v6  ;;  %v1939_v0 = vmul.f32 %v4932_v39, %v6122_v36  ;;  %v1942_v43 = vmul.f32 %v4932_v39, %v6123_v59  ;;  %v2048_v55 = vsel %vm6124_vm9, 1.0, %v1943_v37 }
 0x3b7   : > { %v2094_v44 = vsel %vm6125_vm11, 1.0, %v1989_v12  ;;  %v1941_v40 = vmul.f32 %v4932_v39, %v6126_v56  ;;  %v6127_v32 = vsub.f32 %v4725_v1, %v3801_v51  ;;  %v3054_v5 = vpack.c.bf16 %v2048_v55, %v2045_v26 }
 0x3b8   : > { %vm6128_vm15 = vcmp.eq.f32.partialorder %v6071_v54, 0.0  ;;  %vm6129_vm6 = vcmp.eq.f32.partialorder %v3799_v49, 0.0  ;;  %vm6130_vm8 = vcmp.eq.f32.partialorder %v3826_v2, 0.0  ;;  %vm6131_vm5 = vcmp.eq.f32.partialorder %v3773_v35, 0.0 }
 0x3b9   : > { %v1944_v58 = vmul.f32 %v4932_v39, %v6127_v32  ;;  %v2097_v45 = vsel %vm6128_vm15, 1.0, %v1992_v18  ;;  %v2044_v8 = vsel %vm6129_vm6, 1.0, %v1939_v0  ;;  %v2047_v16 = vsel %vm6130_vm8, 1.0, %v1942_v43  ;;  %3055 = vmatprep.subr.bf16.mxu1 %v3054_v5 }
 0x3ba   : > { %v3122_v48 = vpack.c.bf16 %v2097_v45, %v2094_v44  ;;  %v3056_v20 = vpack.c.bf16 %v2047_v16, %v2044_v8  ;;  %v2046_v29 = vsel %vm6131_vm5, 1.0, %v1941_v40  ;;  %vm6132_vm9 = vcmp.eq.f32.partialorder %v3801_v51, 0.0 }
 0x3bb   : > { %v2049_v38 = vsel %vm6132_vm9, 1.0, %v1944_v58  ;;  %v6133_v54 = vsub.f32 %v4725_v1, %v3863_v33  ;;  %v6134_v49 = vsub.f32 %v4725_v1, %v3891_v60  ;;  %v6135_v46 = vsub.f32 %v4725_v1, %v6074_v42 }
 0x3bc   : > { %v3124_v53 = vpack.c.bf16 %v2049_v38, %v2046_v29  ;;  %3123 = vmatprep.subr.bf16.mxu0 %v3122_v48  ;;  %3057 = vmatpush1.bf16.msra.mxu1 %v3056_v20  ;;  %v6136_v51 = vsub.f32 %v4725_v1, %v6077_v28  ;;  %v6137_v37 = vsub.f32 %v4725_v1, %v3857_v30  ;;  %vm6139_vm11 = vcmp.eq.f32.partialorder %v3863_v33, 0.0 }
 0x3bd   : > { %v1946_v13 = vmul.f32 %v4932_v39, %v6133_v54  ;;  %v1949_v2 = vmul.f32 %v4932_v39, %v6134_v49  ;;  %v1995_v35 = vmul.f32 %v4932_v39, %v6135_v46  ;;  %v6138_v12 = vsub.f32 %v4725_v1, %v3887_v57 }
 0x3be   : > { %v1998_v25 = vmul.f32 %v4932_v39, %v6136_v51  ;;  %v1945_v21 = vmul.f32 %v4932_v39, %v6137_v37  ;;  %3125 = vmatpush3.bf16.msra.mxu0 %v3124_v53  ;;  %vm6140_vm15 = vcmp.eq.f32.partialorder %v3891_v60, 0.0  ;;  %vm6141_vm6 = vcmp.eq.f32.partialorder %v6074_v42, 0.0 }
 0x3bf   : > { %v1948_v26 = vmul.f32 %v4932_v39, %v6138_v12  ;;  %v2051_v6 = vsel %vm6139_vm11, 1.0, %v1946_v13  ;;  %v2054_v18 = vsel %vm6140_vm15, 1.0, %v1949_v2  ;;  %v2100_v36 = vsel %vm6141_vm6, 1.0, %v1995_v35 }
 0x3c0   : > { %v6142_v0 = vsub.f32 %v4725_v1, %v3839_v11  ;;  %v3058_v43 = vpack.c.bf16 %v2054_v18, %v2051_v6  ;;  %vm6143_vm8 = vcmp.eq.f32.partialorder %v6077_v28, 0.0  ;;  %vm6144_vm5 = vcmp.eq.f32.partialorder %v3857_v30, 0.0 }
 0x3c1   : > { %v2103_v55 = vsel %vm6143_vm8, 1.0, %v1998_v25  ;;  %v2050_v44 = vsel %vm6144_vm5, 1.0, %v1945_v21  ;;  %vm6145_vm9 = vcmp.eq.f32.partialorder %v3887_v57, 0.0  ;;  %v6146_v42 = vsub.f32 %v4725_v1, %v3865_v34 }
 0x3c2   : > { %v1947_v59 = vmul.f32 %v4932_v39, %v6142_v0  ;;  %v2053_v33 = vsel %vm6145_vm9, 1.0, %v1948_v26  ;;  %v3126_v60 = vpack.c.bf16 %v2103_v55, %v2100_v36  ;;  %vm6147_vm11 = vcmp.eq.f32.partialorder %v3839_v11, 0.0  ;;  %3059 = vmatprep.subr.bf16.mxu1 %v3058_v43 }
 0x3c3   : > { %v3060_v56 = vpack.c.bf16 %v2053_v33, %v2050_v44  ;;  %v1950_v40 = vmul.f32 %v4932_v39, %v6146_v42  ;;  %v6148_v28 = vsub.f32 %v4725_v1, %v3931_v23  ;;  %v6149_v57 = vsub.f32 %v4725_v1, %v6034_v19 }
 0x3c4   : > { %v2052_v32 = vsel %vm6147_vm11, 1.0, %v1947_v59  ;;  %v6150_v5 = vsub.f32 %v4725_v1, %v6080_v7  ;;  %v6151_v11 = vsub.f32 %v4725_v1, %v6083_v27  ;;  %3127 = vmatprep.subr.bf16.mxu0 %v3126_v60  ;;  %vm6152_vm15 = vcmp.eq.f32.partialorder %v3865_v34, 0.0 }
 0x3c5   : > { %v1952_v30 = vmul.f32 %v4932_v39, %v6148_v28  ;;  %v1955_v58 = vmul.f32 %v4932_v39, %v6149_v57  ;;  %3061 = vmatpush1.bf16.msra.mxu1 %v3060_v56  ;;  %v2055_v16 = vsel %vm6152_vm15, 1.0, %v1950_v40  ;;  %v6153_v48 = vsub.f32 %v4725_v1, %v3900_v3 }
 0x3c6   : > { %v2001_v45 = vmul.f32 %v4932_v39, %v6150_v5  ;;  %v2004_v8 = vmul.f32 %v4932_v39, %v6151_v11  ;;  %v6154_v29 = vsub.f32 %v4725_v1, %v6033_v9  ;;  %v6155_v53 = vsub.f32 %v4725_v1, %v3893_v61 }
 0x3c7   : > { %v1951_v20 = vmul.f32 %v4932_v39, %v6153_v48  ;;  %v3128_v13 = vpack.c.bf16 %v2055_v16, %v2052_v32  ;;  %vm6156_vm6 = vcmp.eq.f32.partialorder %v3931_v23, 0.0  ;;  %vm6157_vm8 = vcmp.eq.f32.partialorder %v6034_v19, 0.0  ;;  %v6185_v48 = vld [vmem:[#allocation70_spill] sm:$0xff] }
 0x3c8   : > { %v1954_v38 = vmul.f32 %v4932_v39, %v6154_v29  ;;  %v1953_v54 = vmul.f32 %v4932_v39, %v6155_v53  ;;  %v2057_v34 = vsel %vm6156_vm6, 1.0, %v1952_v30  ;;  %v2060_v49 = vsel %vm6157_vm8, 1.0, %v1955_v58 }
 0x3c9   : > { %vm6158_vm5 = vcmp.eq.f32.partialorder %v6080_v7, 0.0  ;;  %v3062_v46 = vpack.c.bf16 %v2060_v49, %v2057_v34  ;;  %vm6159_vm9 = vcmp.eq.f32.partialorder %v6083_v27, 0.0  ;;  %vm6160_vm11 = vcmp.eq.f32.partialorder %v3900_v3, 0.0  ;;  %3129 = vmatpush3.bf16.msra.mxu0 %v3128_v13  ;;  %v6190_v13 = vld [vmem:[#allocation23_spill] sm:$0xff] }
 0x3ca   : > { %v2106_v2 = vsel %vm6158_vm5, 1.0, %v2001_v45  ;;  %v2109_v35 = vsel %vm6159_vm9, 1.0, %v2004_v8  ;;  %v2056_v51 = vsel %vm6160_vm11, 1.0, %v1951_v20  ;;  %vm6161_vm15 = vcmp.eq.f32.partialorder %v6033_v9, 0.0 }
 0x3cb   : > { %v2059_v25 = vsel %vm6161_vm15, 1.0, %v1954_v38  ;;  %v3130_v37 = vpack.c.bf16 %v2109_v35, %v2106_v2  ;;  %v6162_v19 = vsub.f32 %v4725_v1, %v6035_v15  ;;  %vm6163_vm6 = vcmp.eq.f32.partialorder %v3893_v61, 0.0  ;;  %3063 = vmatprep.subr.bf16.mxu1 %v3062_v46  ;;  %v6188_v38 = vld [vmem:[#allocation20_spill] sm:$0xff]  ;;  %v6192_v2 = vld [vmem:[#allocation19_spill] sm:$0xff] }
 0x3cc   : > { %v3064_v23 = vpack.c.bf16 %v2059_v25, %v2056_v51  ;;  %v2058_v7 = vsel %vm6163_vm6, 1.0, %v1953_v54  ;;  %v6164_v27 = vsub.f32 %v4725_v1, %v6037_v41  ;;  %v6165_v9 = vsub.f32 %v4725_v1, %v6040_v24 }
 0x3cd   : > { %v1956_v21 = vmul.f32 %v4932_v39, %v6162_v19  ;;  %v6166_v26 = vsub.f32 %v4725_v1, %v6086_v4  ;;  %v6167_v61 = vsub.f32 %v4725_v1, %v6089_v62  ;;  %3131 = vmatprep.subr.bf16.mxu0 %v3130_v37  ;;  %vm6168_vm8 = vcmp.eq.f32.partialorder %v6035_v15, 0.0 }
 0x3ce   : > { %v1958_v3 = vmul.f32 %v4932_v39, %v6164_v27  ;;  %v1961_v12 = vmul.f32 %v4932_v39, %v6165_v9  ;;  %3065 = vmatpush1.bf16.msra.mxu1 %v3064_v23  ;;  %v6169_v0 = vsub.f32 %v4725_v1, %v6036_v22  ;;  %v6170_v43 = vsub.f32 %v4725_v1, %v6039_v47  ;;  %v6200_v9 = vld [vmem:[#allocation22_spill] sm:$0xff] }
 0x3cf   : > { %v2007_v6 = vmul.f32 %v4932_v39, %v6166_v26  ;;  %v2010_v18 = vmul.f32 %v4932_v39, %v6167_v61  ;;  %v2061_v36 = vsel %vm6168_vm8, 1.0, %v1956_v21  ;;  %v6171_v44 = vsub.f32 %v4725_v1, %v6038_v63 }
 0x3d0   : > { %v1957_v59 = vmul.f32 %v4932_v39, %v6169_v0  ;;  %v1960_v55 = vmul.f32 %v4932_v39, %v6170_v43  ;;  %v3132_v60 = vpack.c.bf16 %v2061_v36, %v2058_v7  ;;  %vm6172_vm5 = vcmp.eq.f32.partialorder %v6037_v41, 0.0  ;;  %v6205_v36 = vld [vmem:[#allocation30_spill] sm:$0xff]  ;;  %v6207_v43 = vld [vmem:[#allocation73_spill] sm:$0xff] }
 0x3d1   : > { %v1959_v33 = vmul.f32 %v4932_v39, %v6171_v44  ;;  %v2063_v15 = vsel %vm6172_vm5, 1.0, %v1958_v3  ;;  %vm6173_vm9 = vcmp.eq.f32.partialorder %v6040_v24, 0.0  ;;  %vm6174_vm11 = vcmp.eq.f32.partialorder %v6086_v4, 0.0 }
 0x3d2   : > { %v2066_v56 = vsel %vm6173_vm9, 1.0, %v1961_v12  ;;  %v2112_v42 = vsel %vm6174_vm11, 1.0, %v2007_v6  ;;  %vm6175_vm15 = vcmp.eq.f32.partialorder %v6089_v62, 0.0  ;;  %vm6176_vm6 = vcmp.eq.f32.partialorder %v6036_v22, 0.0  ;;  %3133 = vmatpush3.bf16.msra.mxu0 %v3132_v60  ;;  %v6180_v62 = vld [vmem:[#allocation21_spill] sm:$0xff]  ;;  %v6203_v6 = vld [vmem:[#allocation27_spill] sm:$0xff] }
 0x3d3   : > { %v3066_v40 = vpack.c.bf16 %v2066_v56, %v2063_v15  ;;  %v2115_v32 = vsel %vm6175_vm15, 1.0, %v2010_v18  ;;  %v2062_v28 = vsel %vm6176_vm6, 1.0, %v1957_v59  ;;  %vm6177_vm8 = vcmp.eq.f32.partialorder %v6039_v47, 0.0  ;;  %v6182_v47 = vld [vmem:[#allocation24_spill] sm:$0xff]  ;;  %v6211_v56 = vld [vmem:[#allocation26_spill] sm:$0xff] }
 0x3d4   : > { %v2065_v30 = vsel %vm6177_vm8, 1.0, %v1960_v55  ;;  %v3134_v57 = vpack.c.bf16 %v2115_v32, %v2112_v42  ;;  %v6178_v24 = vsub.f32 %v4725_v1, %v6041_v14  ;;  %vm6179_vm5 = vcmp.eq.f32.partialorder %v6038_v63, 0.0  ;;  %v6213_v32 = vld [vmem:[#allocation29_spill] sm:$0xff] }
 0x3d5   : > { %v3068_v41 = vpack.c.bf16 %v2065_v30, %v2062_v28  ;;  %v2064_v4 = vsel %vm6179_vm5, 1.0, %v1959_v33  ;;  %3067 = vmatprep.subr.bf16.mxu1 %v3066_v40  ;;  %v6181_v5 = vsub.f32 %v4725_v1, %v6180_v62  ;;  %v6183_v45 = vsub.f32 %v4725_v1, %v6182_v47 }
 0x3d6   : > { %v1962_v58 = vmul.f32 %v4932_v39, %v6178_v24  ;;  %v6184_v8 = vsub.f32 %v4725_v1, %v6092_v50  ;;  %v6186_v63 = vsub.f32 %v4725_v1, %v6185_v48  ;;  %3135 = vmatprep.subr.bf16.mxu0 %v3134_v57  ;;  %vm6187_vm9 = vcmp.eq.f32.partialorder %v6041_v14, 0.0  ;;  %v6215_v57 = vld [vmem:[#allocation25_spill] sm:$0xff] }
 0x3d7   : > { %v1964_v22 = vmul.f32 %v4932_v39, %v6181_v5  ;;  %v1967_v11 = vmul.f32 %v4932_v39, %v6183_v45  ;;  %3069 = vmatpush1.bf16.msra.mxu1 %v3068_v41  ;;  %v6189_v53 = vsub.f32 %v4725_v1, %v6188_v38  ;;  %v6191_v34 = vsub.f32 %v4725_v1, %v6190_v13 }
 0x3d8   : > { %v2013_v16 = vmul.f32 %v4932_v39, %v6184_v8  ;;  %v2016_v20 = vmul.f32 %v4932_v39, %v6186_v63  ;;  %v2067_v29 = vsel %vm6187_vm9, 1.0, %v1962_v58  ;;  %v6193_v46 = vsub.f32 %v4725_v1, %v6192_v2 }
 0x3d9   : > { %v1963_v54 = vmul.f32 %v4932_v39, %v6189_v53  ;;  %v1966_v49 = vmul.f32 %v4932_v39, %v6191_v34  ;;  %v3136_v51 = vpack.c.bf16 %v2067_v29, %v2064_v4  ;;  %vm6194_vm11 = vcmp.eq.f32.partialorder %v6180_v62, 0.0 }
 0x3da   : > { %v1965_v35 = vmul.f32 %v4932_v39, %v6193_v46  ;;  %v2069_v14 = vsel %vm6194_vm11, 1.0, %v1964_v22  ;;  %vm6195_vm15 = vcmp.eq.f32.partialorder %v6182_v47, 0.0  ;;  %vm6196_vm6 = vcmp.eq.f32.partialorder %v6092_v50, 0.0 }
 0x3db   : > { %v2072_v25 = vsel %vm6195_vm15, 1.0, %v1967_v11  ;;  %v2118_v37 = vsel %vm6196_vm6, 1.0, %v2013_v16  ;;  %vm6197_vm8 = vcmp.eq.f32.partialorder %v6185_v48, 0.0  ;;  %vm6198_vm5 = vcmp.eq.f32.partialorder %v6188_v38, 0.0  ;;  %3137 = vmatpush3.bf16.msra.mxu0 %v3136_v51  ;;  %v6223_v48 = vld [vmem:[#allocation28_spill] sm:$0xff] }
 0x3dc   : > { %v3070_v23 = vpack.c.bf16 %v2072_v25, %v2069_v14  ;;  %v2121_v19 = vsel %vm6197_vm8, 1.0, %v2016_v20  ;;  %v2068_v21 = vsel %vm6198_vm5, 1.0, %v1963_v54  ;;  %vm6199_vm9 = vcmp.eq.f32.partialorder %v6190_v13, 0.0  ;;  %v6228_v54 = vld [vmem:[#allocation36_spill] sm:$0xff] }
 0x3dd   : > { %v2071_v7 = vsel %vm6199_vm9, 1.0, %v1966_v49  ;;  %v3138_v27 = vpack.c.bf16 %v2121_v19, %v2118_v37  ;;  %v6201_v12 = vsub.f32 %v4725_v1, %v6200_v9  ;;  %vm6202_vm11 = vcmp.eq.f32.partialorder %v6192_v2, 0.0  ;;  %v6233_v14 = vld [vmem:[#allocation32_spill] sm:$0xff] }
 0x3de   : > { %v3072_v3 = vpack.c.bf16 %v2071_v7, %v2068_v21  ;;  %v2070_v50 = vsel %vm6202_vm11, 1.0, %v1965_v35  ;;  %3071 = vmatprep.subr.bf16.mxu1 %v3070_v23  ;;  %v6204_v61 = vsub.f32 %v4725_v1, %v6203_v6  ;;  %v6206_v0 = vsub.f32 %v4725_v1, %v6205_v36  ;;  %v6235_v23 = vld [vmem:[#allocation35_spill] sm:$0xff] }
 0x3df   : > { %v1968_v26 = vmul.f32 %v4932_v39, %v6201_v12  ;;  %v6208_v55 = vsub.f32 %v4725_v1, %v6207_v43  ;;  %v6209_v33 = vsub.f32 %v4725_v1, %v6101_v31  ;;  %3139 = vmatprep.subr.bf16.mxu0 %v3138_v27  ;;  %vm6210_vm15 = vcmp.eq.f32.partialorder %v6200_v9, 0.0  ;;  %v6237_v7 = vld [vmem:[#allocation31_spill] sm:$0xff] }
 0x3e0   : > { %v1970_v18 = vmul.f32 %v4932_v39, %v6204_v61  ;;  %v1973_v59 = vmul.f32 %v4932_v39, %v6206_v0  ;;  %3073 = vmatpush1.bf16.msra.mxu1 %v3072_v3  ;;  %v6212_v42 = vsub.f32 %v4725_v1, %v6211_v56  ;;  %v6214_v28 = vsub.f32 %v4725_v1, %v6213_v32 }
 0x3e1   : > { %v2019_v44 = vmul.f32 %v4932_v39, %v6208_v55  ;;  %v2022_v60 = vmul.f32 %v4932_v39, %v6209_v33  ;;  %v2073_v15 = vsel %vm6210_vm15, 1.0, %v1968_v26  ;;  %v6216_v41 = vsub.f32 %v4725_v1, %v6215_v57 }
 0x3e2   : > { %v1969_v40 = vmul.f32 %v4932_v39, %v6212_v42  ;;  %v1972_v30 = vmul.f32 %v4932_v39, %v6214_v28  ;;  %v3140_v58 = vpack.c.bf16 %v2073_v15, %v2070_v50  ;;  %vm6217_vm6 = vcmp.eq.f32.partialorder %v6203_v6, 0.0  ;;  %v6250_v15 = vld [vmem:[#allocation42_spill] sm:$0xff]  ;;  %v6253_v28 = vld [vmem:[#allocation87_spill] sm:$0xff] }
 0x3e3   : > { %v1971_v24 = vmul.f32 %v4932_v39, %v6216_v41  ;;  %v2075_v4 = vsel %vm6217_vm6, 1.0, %v1970_v18  ;;  %vm6218_vm8 = vcmp.eq.f32.partialorder %v6205_v36, 0.0  ;;  %vm6219_vm5 = vcmp.eq.f32.partialorder %v6207_v43, 0.0  ;;  %v6245_v43 = vld [vmem:[#allocation34_spill] sm:$0xff] }
 0x3e4   : > { %v2078_v62 = vsel %vm6218_vm8, 1.0, %v1973_v59  ;;  %v2124_v5 = vsel %vm6219_vm5, 1.0, %v2019_v44  ;;  %vm6220_vm9 = vcmp.eq.f32.partialorder %v6101_v31, 0.0  ;;  %vm6221_vm11 = vcmp.eq.f32.partialorder %v6211_v56, 0.0  ;;  %3141 = vmatpush3.bf16.msra.mxu0 %v3140_v58  ;;  %v6226_v31 = vld [vmem:[#allocation33_spill] sm:$0xff] }
 0x3e5   : > { %v3074_v22 = vpack.c.bf16 %v2078_v62, %v2075_v4  ;;  %v2127_v47 = vsel %vm6220_vm9, 1.0, %v2022_v60  ;;  %v2074_v45 = vsel %vm6221_vm11, 1.0, %v1969_v40  ;;  %vm6222_vm15 = vcmp.eq.f32.partialorder %v6213_v32, 0.0  ;;  %v6258_v62 = vld [vmem:[#allocation41_spill] sm:$0xff] }
 0x3e6   : > { %v2077_v11 = vsel %vm6222_vm15, 1.0, %v1972_v30  ;;  %v3142_v8 = vpack.c.bf16 %v2127_v47, %v2124_v5  ;;  %v6224_v63 = vsub.f32 %v4725_v1, %v6223_v48  ;;  %vm6225_vm6 = vcmp.eq.f32.partialorder %v6215_v57, 0.0  ;;  %v6260_v47 = vld [vmem:[#allocation45_spill] sm:$0xff] }
 0x3e7   : > { %v3076_v16 = vpack.c.bf16 %v2077_v11, %v2074_v45  ;;  %v2076_v29 = vsel %vm6225_vm6, 1.0, %v1971_v24  ;;  %3075 = vmatprep.subr.bf16.mxu1 %v3074_v22  ;;  %v6227_v38 = vsub.f32 %v4725_v1, %v6226_v31  ;;  %v6229_v13 = vsub.f32 %v4725_v1, %v6228_v54  ;;  %v6256_v24 = vld [vmem:[#allocation38_spill] sm:$0xff] }
 0x3e8   : > { %v1974_v20 = vmul.f32 %v4932_v39, %v6224_v63  ;;  %v6230_v49 = vsub.f32 %v4725_v1, %v6104_v52  ;;  %v6231_v46 = vsub.f32 %v4725_v1, %v6107_v10  ;;  %3143 = vmatprep.subr.bf16.mxu0 %v3142_v8  ;;  %vm6232_vm8 = vcmp.eq.f32.partialorder %v6223_v48, 0.0 }
 0x3e9   : > { %v1976_v53 = vmul.f32 %v4932_v39, %v6227_v38  ;;  %v1979_v34 = vmul.f32 %v4932_v39, %v6229_v13  ;;  %3077 = vmatpush1.bf16.msra.mxu1 %v3076_v16  ;;  %v6234_v25 = vsub.f32 %v4725_v1, %v6233_v14  ;;  %v6236_v19 = vsub.f32 %v4725_v1, %v6235_v23  ;;  %v5357_v13 = vld [vmem:[%s5681_s4] sm:$0xff] }
 0x3ea   : > { %v2025_v2 = vmul.f32 %v4932_v39, %v6230_v49  ;;  %v2028_v35 = vmul.f32 %v4932_v39, %v6231_v46  ;;  %v2079_v51 = vsel %vm6232_vm8, 1.0, %v1974_v20  ;;  %v6238_v27 = vsub.f32 %v4725_v1, %v6237_v7  ;;  %v6269_v46 = vld [vmem:[#allocation90_spill] sm:$0xff] }
 0x3eb   : > { %v1975_v37 = vmul.f32 %v4932_v39, %v6234_v25  ;;  %v1978_v21 = vmul.f32 %v4932_v39, %v6236_v19  ;;  %v3144_v9 = vpack.c.bf16 %v2079_v51, %v2076_v29  ;;  %vm6239_vm5 = vcmp.eq.f32.partialorder %v6226_v31, 0.0 }
 0x3ec   : > { %v1977_v3 = vmul.f32 %v4932_v39, %v6238_v27  ;;  %v2081_v12 = vsel %vm6239_vm5, 1.0, %v1976_v53  ;;  %vm6240_vm9 = vcmp.eq.f32.partialorder %v6228_v54, 0.0  ;;  %vm6241_vm11 = vcmp.eq.f32.partialorder %v6104_v52, 0.0 }
 0x3ed   : > { %v2084_v26 = vsel %vm6240_vm9, 1.0, %v1979_v34  ;;  %v2130_v50 = vsel %vm6241_vm11, 1.0, %v2025_v2  ;;  %vm6242_vm15 = vcmp.eq.f32.partialorder %v6107_v10, 0.0  ;;  %vm6243_vm6 = vcmp.eq.f32.partialorder %v6233_v14, 0.0  ;;  %3145 = vmatpush3.bf16.msra.mxu0 %v3144_v9  ;;  %v6248_v10 = vld [vmem:[#allocation39_spill] sm:$0xff]  ;;  %v6271_v14 = vld [vmem:[#allocation44_spill] sm:$0xff] }
 0x3ee   : > { %v3078_v6 = vpack.c.bf16 %v2084_v26, %v2081_v12  ;;  %v2133_v61 = vsel %vm6242_vm15, 1.0, %v2028_v35  ;;  %v2080_v18 = vsel %vm6243_vm6, 1.0, %v1975_v37  ;;  %vm6244_vm8 = vcmp.eq.f32.partialorder %v6235_v23, 0.0  ;;  %v6273_v23 = vld [vmem:[#allocation47_spill] sm:$0xff]  ;;  %v5384_v9 = vld [vmem:[%s5681_s4 + $0x20] sm:$0xff] }
 0x3ef   : > { %v2083_v36 = vsel %vm6244_vm8, 1.0, %v1978_v21  ;;  %v3146_v0 = vpack.c.bf16 %v2133_v61, %v2130_v50  ;;  %v6246_v55 = vsub.f32 %v4725_v1, %v6245_v43  ;;  %vm6247_vm5 = vcmp.eq.f32.partialorder %v6237_v7, 0.0  ;;  %v6275_v7 = vld [vmem:[#allocation51_spill] sm:$0xff]  ;;  %v6278_v26 = vld [vmem:[#allocation54_spill] sm:$0xff] }
 0x3f0   : > { %v3080_v59 = vpack.c.bf16 %v2083_v36, %v2080_v18  ;;  %v2082_v52 = vsel %vm6247_vm5, 1.0, %v1977_v3  ;;  %3079 = vmatprep.subr.bf16.mxu1 %v3078_v6  ;;  %v6249_v33 = vsub.f32 %v4725_v1, %v6248_v10  ;;  %v6251_v56 = vsub.f32 %v4725_v1, %v6250_v15  ;;  %v6280_v61 = vld [vmem:[#allocation50_spill] sm:$0xff] }
 0x3f1   : > { %v1980_v44 = vmul.f32 %v4932_v39, %v6246_v55  ;;  %v6252_v40 = vsub.f32 %v4725_v1, %v4624_v17  ;;  %v6254_v30 = vsub.f32 %v4725_v1, %v6253_v28  ;;  %3147 = vmatprep.subr.bf16.mxu0 %v3146_v0  ;;  %vm6255_vm9 = vcmp.eq.f32.partialorder %v6245_v43, 0.0  ;;  %v6266_v17 = vld [vmem:[#allocation48_spill] sm:$0xff]  ;;  %v6282_v0 = vld [vmem:[#allocation53_spill] sm:$0xff] }
 0x3f2   : > { %v1982_v60 = vmul.f32 %v4932_v39, %v6249_v33  ;;  %v1985_v42 = vmul.f32 %v4932_v39, %v6251_v56  ;;  %3081 = vmatpush1.bf16.msra.mxu1 %v3080_v59  ;;  %v6257_v58 = vsub.f32 %v4725_v1, %v6256_v24  ;;  %v6259_v5 = vsub.f32 %v4725_v1, %v6258_v62  ;;  %v6290_v28 = vld [vmem:[#allocation57_spill] sm:$0xff] }
 0x3f3   : > { %v2031_v32 = vmul.f32 %v4932_v39, %v6252_v40  ;;  %v2034_v57 = vmul.f32 %v4932_v39, %v6254_v30  ;;  %v2085_v41 = vsel %vm6255_vm9, 1.0, %v1980_v44  ;;  %v6261_v45 = vsub.f32 %v4725_v1, %v6260_v47 }
 0x3f4   : > { %v1981_v4 = vmul.f32 %v4932_v39, %v6257_v58  ;;  %v1984_v22 = vmul.f32 %v4932_v39, %v6259_v5  ;;  %v3148_v8 = vpack.c.bf16 %v2085_v41, %v2082_v52  ;;  %vm6262_vm11 = vcmp.eq.f32.partialorder %v6248_v10, 0.0  ;;  %v6292_v41 = vld [vmem:[#allocation60_spill] sm:$0xff] }
 0x3f5   : > { %v1988_v11 = vmul.f32 %v4932_v39, %v6261_v45  ;;  %v2087_v16 = vsel %vm6262_vm11, 1.0, %v1982_v60  ;;  %vm6263_vm15 = vcmp.eq.f32.partialorder %v6250_v15, 0.0  ;;  %v2136_v63 = vsel %vm1411_vm1, 1.0, %v2031_v32 }
 0x3f6   : > { %v2090_v48 = vsel %vm6263_vm15, 1.0, %v1985_v42  ;;  %v2139_v29 = vsel %vm1414_vm7, 1.0, %v2034_v57  ;;  %vm6264_vm6 = vcmp.eq.f32.partialorder %v6256_v24, 0.0  ;;  %vm6265_vm8 = vcmp.eq.f32.partialorder %v6258_v62, 0.0  ;;  %3149 = vmatpush3.bf16.msra.mxu0 %v3148_v8  ;;  %v5417_v42 = vld [vmem:[%s5681_s4 + $0x18] sm:$0xff]  ;;  %v6294_v62 = vld [vmem:[#allocation56_spill] sm:$0xff] }
 0x3f7   : > { %v3082_v20 = vpack.c.bf16 %v2090_v48, %v2087_v16  ;;  %v2086_v31 = vsel %vm6264_vm6, 1.0, %v1981_v4  ;;  %v2089_v38 = vsel %vm6265_vm8, 1.0, %v1984_v22  ;;  %v3150_v53 = vpack.c.bf16 %v2139_v29, %v2136_v63  ;;  %v5432_v4 = vld [vmem:[%s5681_s4 + $0x10] sm:$0xff]  ;;  %v6298_v8 = vld [vmem:[#allocation63_spill] sm:$0xff] }
 0x3f8   : > { %v3084_v54 = vpack.c.bf16 %v2089_v38, %v2086_v31  ;;  %v6267_v34 = vsub.f32 %v4725_v1, %v6266_v17  ;;  %vm6268_vm7 = vcmp.eq.f32.partialorder %v6260_v47, 0.0  ;;  %v6270_v35 = vsub.f32 %v4725_v1, %v6269_v46  ;;  %v6296_v47 = vld [vmem:[#allocation59_spill] sm:$0xff]  ;;  %v6300_v63 = vld [vmem:[#allocation92_spill] sm:$0xff]  ;;  %v6303_v38 = vld [vmem:[#allocation66_spill] sm:$0xff] }
 0x3f9   : > { %v2093_v2 = vsel %vm6268_vm7, 1.0, %v1988_v11  ;;  %3083 = vmatprep.subr.bf16.mxu1 %v3082_v20  ;;  %v6272_v25 = vsub.f32 %v4725_v1, %v6271_v14  ;;  %v6274_v19 = vsub.f32 %v4725_v1, %v6273_v23  ;;  %v6276_v27 = vsub.f32 %v4725_v1, %v6275_v7  ;;  %3151 = vmatprep.subr.bf16.mxu0 %v3150_v53 }
 0x3fa   : > { %v1991_v49 = vmul.f32 %v4932_v39, %v6267_v34  ;;  %v2037_v51 = vmul.f32 %v4932_v39, %v6270_v35  ;;  %3085 = vmatpush1.bf16.msra.mxu1 %v3084_v54  ;;  %vm6277_vm1 = vcmp.eq.f32.partialorder %v6266_v17, 0.0  ;;  %v6279_v50 = vsub.f32 %v4725_v1, %v6278_v26  ;;  %2368 = vmatmul.mubr.f32.vlgmr.msra.gmra.mrb[74].mxu0 %v5357_v13  ;;  %v6305_v17 = vld [vmem:[#allocation62_spill] sm:$0xff] }
 0x3fb   : > { %v1987_v37 = vmul.f32 %v4932_v39, %v6272_v25  ;;  %v1990_v21 = vmul.f32 %v4932_v39, %v6274_v19  ;;  %v1994_v3 = vmul.f32 %v4932_v39, %v6276_v27  ;;  %v6281_v18 = vsub.f32 %v4725_v1, %v6280_v61  ;;  %3153 = vmatpush3.bf16.msra.mxu0 %v3150_v53  ;;  %v5470_v25 = vld [vmem:[%s5681_s4 + $0x28] sm:$0xff] }
 0x3fc   : > { %v2096_v12 = vsel %vm6277_vm1, 1.0, %v1991_v49  ;;  %v1997_v6 = vmul.f32 %v4932_v39, %v6279_v50  ;;  %v6283_v59 = vsub.f32 %v4725_v1, %v6282_v0  ;;  %v2142_v44 = vsel %vm1417_vm3, 1.0, %v2037_v51  ;;  %2372 = vmatprep.mubr.f32.mxu0 %v5384_v9  ;;  %v6308_v51 = vld [vmem:[#allocation91_spill] sm:$0xff] }
 0x3fd   : > { %v1993_v36 = vmul.f32 %v4932_v39, %v6281_v18  ;;  %v3086_v55 = vpack.c.bf16 %v2096_v12, %v2093_v2  ;;  %vm6284_vm5 = vcmp.eq.f32.partialorder %v6271_v14, 0.0  ;;  %vm6285_vm9 = vcmp.eq.f32.partialorder %v6273_v23, 0.0  ;;  %3023 = vmatprep.subr.mxu0 %v2142_v44  ;;  %v6315_v12 = vld [vmem:[#allocation69_spill] sm:$0xff] }
 0x3fe   : > { %v1996_v43 = vmul.f32 %v4932_v39, %v6283_v59  ;;  %v2092_v52 = vsel %vm6284_vm5, 1.0, %v1987_v37  ;;  %v2095_v10 = vsel %vm6285_vm9, 1.0, %v1990_v21  ;;  %vm6286_vm11 = vcmp.eq.f32.partialorder %v6275_v7, 0.0  ;;  %2373 = vmatmul.mubr.f32.gmra.mrb[76].mxu0 %v5417_v42  ;;  %v6312_v21 = vld [vmem:[#allocation65_spill] sm:$0xff] }
 0x3ff   : > { %v3088_v33 = vpack.c.bf16 %v2095_v10, %v2092_v52  ;;  %v2099_v60 = vsel %vm6286_vm11, 1.0, %v1994_v3  ;;  %vm6287_vm15 = vcmp.eq.f32.partialorder %v6278_v26, 0.0  ;;  %vm6288_vm6 = vcmp.eq.f32.partialorder %v6280_v61, 0.0  ;;  %3087 = vmatprep.subr.bf16.mxu1 %v3086_v55  ;;  %3024 = vmatpush3.msra.mxu0 %v2142_v44  ;;  %v6322_v55 = vld [vmem:[#allocation71_spill] sm:$0xff] }
 0x400   : > { %v2102_v15 = vsel %vm6287_vm15, 1.0, %v1997_v6  ;;  %v2098_v56 = vsel %vm6288_vm6, 1.0, %v1993_v36  ;;  %vm6289_vm3 = vcmp.eq.f32.partialorder %v6282_v0, 0.0  ;;  %v6291_v30 = vsub.f32 %v4725_v1, %v6290_v28  ;;  %3025 = vmatprep.mubr.msk.f32.mxu0 %vm1523_vm4, %v5432_v4  ;;  %v6317_v6 = vld [vmem:[#allocation72_spill] sm:$0xff]  ;;  %v6324_v10 = vld [vmem:[#allocation75_spill] sm:$0xff] }
 0x401   : > { %v3090_v40 = vpack.c.bf16 %v2102_v15, %v2099_v60  ;;  %v2101_v32 = vsel %vm6289_vm3, 1.0, %v1996_v43  ;;  %v6293_v24 = vsub.f32 %v4725_v1, %v6292_v41  ;;  %3089 = vmatpush1.bf16.msra.mxu1 %v3088_v33  ;;  %v6295_v5 = vsub.f32 %v4725_v1, %v6294_v62  ;;  %v6319_v36 = vld [vmem:[#allocation68_spill] sm:$0xff]  ;;  %v6326_v15 = vld [vmem:[#allocation78_spill] sm:$0xff] }
 0x402   : > { %v2000_v57 = vmul.f32 %v4932_v39, %v6291_v30  ;;  %v6297_v45 = vsub.f32 %v4725_v1, %v6296_v47  ;;  %v6299_v16 = vsub.f32 %v4725_v1, %v6298_v8  ;;  %v1930_v20 = vsub.f32 %v4725_v1, %v6300_v63  ;;  %3026 = vmatmul.mubr.msk.f32.vlgmr.msra.gmra.mrb[78].mxu0 %vm1523_vm4, %v5470_v25 }
 0x403   : > { %v2003_v58 = vmul.f32 %v4932_v39, %v6293_v24  ;;  %v1999_v22 = vmul.f32 %v4932_v39, %v6295_v5  ;;  %3091 = vmatprep.subr.bf16.mxu1 %v3090_v40  ;;  %vm6301_vm8 = vcmp.eq.f32.partialorder %v6290_v28, 0.0  ;;  %vm6302_vm7 = vcmp.eq.f32.partialorder %v6292_v41, 0.0 }
 0x404   : > { %v2002_v11 = vmul.f32 %v4932_v39, %v6297_v45  ;;  %v2006_v48 = vmul.f32 %v4932_v39, %v6299_v16  ;;  %v2105_v29 = vsel %vm6301_vm8, 1.0, %v2000_v57  ;;  %v6304_v53 = vsub.f32 %v4725_v1, %v6303_v38 }
 0x405   : > { %v2108_v31 = vsel %vm6302_vm7, 1.0, %v2003_v58  ;;  %v6306_v34 = vsub.f32 %v4725_v1, %v6305_v17  ;;  %v3092_v2 = vpack.c.bf16 %v2101_v32, %v2098_v56  ;;  %vm6307_vm1 = vcmp.eq.f32.partialorder %v6294_v62, 0.0 }
 0x406   : > { %v2009_v54 = vmul.f32 %v4932_v39, %v6304_v53  ;;  %v3094_v46 = vpack.c.bf16 %v2108_v31, %v2105_v29  ;;  %v2104_v35 = vsel %vm6307_vm1, 1.0, %v1999_v22  ;;  %v1929_v14 = vsub.f32 %v4725_v1, %v6308_v51  ;;  %v6338_v29 = vld [vmem:[#allocation81_spill] sm:$0xff]  ;;  %v6340_v53 = vld [vmem:[#allocation84_spill] sm:$0xff] }
 0x407   : > { %v2005_v49 = vmul.f32 %v4932_v39, %v6306_v34  ;;  %vm6309_vm5 = vcmp.eq.f32.partialorder %v6296_v47, 0.0  ;;  %vm6310_vm9 = vcmp.eq.f32.partialorder %v6298_v8, 0.0  ;;  %vm6311_vm11 = vcmp.eq.f32.partialorder %v6303_v38, 0.0  ;;  %3093 = vmatpush1.bf16.msra.mxu1 %v3092_v2  ;;  %v6334_v47 = vld [vmem:[#allocation74_spill] sm:$0xff]  ;;  %v6336_v8 = vld [vmem:[#allocation77_spill] sm:$0xff]  ;;  %v6342_v34 = vld [vmem:[#allocation80_spill] sm:$0xff] }
 0x408   : > { %v2107_v37 = vsel %vm6309_vm5, 1.0, %v2002_v11  ;;  %v2111_v23 = vsel %vm6310_vm9, 1.0, %v2006_v48  ;;  %v2114_v19 = vsel %vm6311_vm11, 1.0, %v2009_v54  ;;  %v6313_v7 = vsub.f32 %v4725_v1, %v6312_v21  ;;  %3095 = vmatprep.subr.bf16.mxu1 %v3094_v46  ;;  %v6344_v46 = vld [vmem:[#allocation83_spill] sm:$0xff] }
 0x409   : > { %vm6314_vm15 = vcmp.eq.f32.partialorder %v6305_v17, 0.0  ;;  %v6316_v26 = vsub.f32 %v4725_v1, %v6315_v12  ;;  %v6318_v61 = vsub.f32 %v4725_v1, %v6317_v6  ;;  %v6320_v0 = vsub.f32 %v4725_v1, %v6319_v36 }
 0x40a   : > { %v2008_v27 = vmul.f32 %v4932_v39, %v6313_v7  ;;  %v2110_v3 = vsel %vm6314_vm15, 1.0, %v2005_v49  ;;  %vm6321_vm6 = vcmp.eq.f32.partialorder %v6312_v21, 0.0  ;;  %v6323_v44 = vsub.f32 %v4725_v1, %v6322_v55  ;;  %v6348_v21 = vld [vmem:[#allocation86_spill] sm:$0xff] }
 0x40b   : > { %v2012_v50 = vmul.f32 %v4932_v39, %v6316_v26  ;;  %v2015_v18 = vmul.f32 %v4932_v39, %v6318_v61  ;;  %v2011_v59 = vmul.f32 %v4932_v39, %v6320_v0  ;;  %v6325_v33 = vsub.f32 %v4725_v1, %v6324_v10 }
 0x40c   : > { %v2113_v43 = vsel %vm6321_vm6, 1.0, %v2008_v27  ;;  %v2014_v52 = vmul.f32 %v4932_v39, %v6323_v44  ;;  %v6327_v56 = vsub.f32 %v4725_v1, %v6326_v15  ;;  %v3096_v32 = vpack.c.bf16 %v2107_v37, %v2104_v35 }
 0x40d   : > { %v2018_v60 = vmul.f32 %v4932_v39, %v6325_v33  ;;  %v3098_v28 = vpack.c.bf16 %v2114_v19, %v2111_v23  ;;  %vm6328_vm3 = vcmp.eq.f32.partialorder %v6315_v12, 0.0  ;;  %vm6329_vm8 = vcmp.eq.f32.partialorder %v6317_v6, 0.0 }
 0x40e   : > { %v2021_v40 = vmul.f32 %v4932_v39, %v6327_v56  ;;  %v2117_v30 = vsel %vm6328_vm3, 1.0, %v2012_v50  ;;  %v2120_v57 = vsel %vm6329_vm8, 1.0, %v2015_v18  ;;  %v3100_v41 = vpack.c.bf16 %v2113_v43, %v2110_v3  ;;  %3097 = vmatpush1.bf16.msra.mxu1 %v3096_v32  ;;  %v6350_v3 = vld [vmem:[#allocation89_spill] sm:$0xff] }
 0x40f   : > { %v3102_v24 = vpack.c.bf16 %v2120_v57, %v2117_v30  ;;  %vm6330_vm7 = vcmp.eq.f32.partialorder %v6319_v36, 0.0  ;;  %vm6331_vm1 = vcmp.eq.f32.partialorder %v6322_v55, 0.0  ;;  %vm6332_vm5 = vcmp.eq.f32.partialorder %v6324_v10, 0.0  ;;  %3099 = vmatprep.subr.bf16.mxu1 %v3098_v28 }
 0x410   : > { %v2116_v58 = vsel %vm6330_vm7, 1.0, %v2011_v59  ;;  %v2119_v62 = vsel %vm6331_vm1, 1.0, %v2014_v52  ;;  %v2123_v5 = vsel %vm6332_vm5, 1.0, %v2018_v60  ;;  %vm6333_vm9 = vcmp.eq.f32.partialorder %v6326_v15, 0.0  ;;  %v6356_v52 = vld [vmem:[#allocation85_spill] sm:$0xff]  ;;  %v6358_v60 = vld [vmem:[#allocation88_spill] sm:$0xff] }
 0x411   : > { %v2126_v22 = vsel %vm6333_vm9, 1.0, %v2021_v40  ;;  %v6335_v45 = vsub.f32 %v4725_v1, %v6334_v47  ;;  %v6337_v16 = vsub.f32 %v4725_v1, %v6336_v8  ;;  %v6339_v31 = vsub.f32 %v4725_v1, %v6338_v29 }
 0x412   : > { %v6341_v54 = vsub.f32 %v4725_v1, %v6340_v53  ;;  %v6343_v49 = vsub.f32 %v4725_v1, %v6342_v34  ;;  %v6345_v35 = vsub.f32 %v4725_v1, %v6344_v46  ;;  %vm6346_vm11 = vcmp.eq.f32.partialorder %v6334_v47, 0.0  ;;  %3101 = vmatpush1.bf16.msra.mxu1 %v3100_v41 }
 0x413   : > { %v2017_v11 = vmul.f32 %v4932_v39, %v6335_v45  ;;  %v2020_v48 = vmul.f32 %v4932_v39, %v6337_v16  ;;  %v2024_v38 = vmul.f32 %v4932_v39, %v6339_v31  ;;  %vm6347_vm15 = vcmp.eq.f32.partialorder %v6336_v8, 0.0  ;;  %3103 = vmatprep.subr.bf16.mxu1 %v3102_v24 }
 0x414   : > { %v2027_v17 = vmul.f32 %v4932_v39, %v6341_v54  ;;  %v2023_v2 = vmul.f32 %v4932_v39, %v6343_v49  ;;  %v2026_v37 = vmul.f32 %v4932_v39, %v6345_v35  ;;  %v6349_v7 = vsub.f32 %v4725_v1, %v6348_v21 }
 0x415   : > { %v2122_v23 = vsel %vm6346_vm11, 1.0, %v2017_v11  ;;  %v2125_v19 = vsel %vm6347_vm15, 1.0, %v2020_v48  ;;  %v6351_v12 = vsub.f32 %v4725_v1, %v6350_v3  ;;  %vm6352_vm6 = vcmp.eq.f32.partialorder %v6338_v29, 0.0 }
 0x416   : > { %v2030_v27 = vmul.f32 %v4932_v39, %v6349_v7  ;;  %v3108_v50 = vpack.c.bf16 %v2125_v19, %v2122_v23  ;;  %v2129_v6 = vsel %vm6352_vm6, 1.0, %v2024_v38  ;;  %vm6353_vm3 = vcmp.eq.f32.partialorder %v6340_v53, 0.0 }
 0x417   : > { %v2033_v26 = vmul.f32 %v4932_v39, %v6351_v12  ;;  %v2132_v61 = vsel %vm6353_vm3, 1.0, %v2027_v17  ;;  %vm6354_vm8 = vcmp.eq.f32.partialorder %v6342_v34, 0.0  ;;  %vm6355_vm7 = vcmp.eq.f32.partialorder %v6344_v46, 0.0 }
 0x418   : > { %v2128_v18 = vsel %vm6354_vm8, 1.0, %v2023_v2  ;;  %v3110_v36 = vpack.c.bf16 %v2132_v61, %v2129_v6  ;;  %v2131_v0 = vsel %vm6355_vm7, 1.0, %v2026_v37  ;;  %v2135_v59 = vsel %vm1410_vm13, 1.0, %v2030_v27 }
 0x419   : > { %v2138_v43 = vsel %vm1413_vm14, 1.0, %v2033_v26  ;;  %v3112_v55 = vpack.c.bf16 %v2131_v0, %v2128_v18  ;;  %v6357_v10 = vsub.f32 %v4725_v1, %v6356_v52  ;;  %v6359_v15 = vsub.f32 %v4725_v1, %v6358_v60 }
 0x41a   : > { %v3114_v44 = vpack.c.bf16 %v2138_v43, %v2135_v59  ;;  %v3104_v40 = vpack.c.bf16 %v2119_v62, %v2116_v58  ;;  %v2036_v32 = vmul.f32 %v4932_v39, %v1930_v20  ;;  %v2035_v28 = vmul.f32 %v4932_v39, %v1929_v14  ;;  %v582_v14 = vld [vmem:[%s5682_s5] sm:$0xff] }
 0x41b   : > { %v2029_v33 = vmul.f32 %v4932_v39, %v6357_v10  ;;  %v2032_v56 = vmul.f32 %v4932_v39, %v6359_v15  ;;  %v3106_v30 = vpack.c.bf16 %v2126_v22, %v2123_v5  ;;  %v6360_v20 = vmov 0.0  }
 0x41c   : > { %3105 = vmatpush1.bf16.msra.mxu1 %v3104_v40  ;;  %v2141_v1 = vsel %vm1416_vm2, 1.0, %v2036_v32  ;;  %v2140_v39 = vsel %vm1415_vm12, 1.0, %v2035_v28  ;;  %vm6361_vm2 = vcmask 130048  }
 0x41d   : > { %v2134_v57 = vsel %vm1409_vm0, 1.0, %v2029_v33  ;;  %v2137_v41 = vsel %vm1412_vm10, 1.0, %v2032_v56  ;;  %3107 = vmatprep.subr.bf16.mxu1 %v3106_v30  ;;  %vm3159_vm0 = vmpackc.low %vm1523_vm4, %vm1523_vm4 }
 0x41e   : > { %v3116_v24 = vpack.c.bf16 %v2137_v41, %v2134_v57 }
 0x420   : > { %3109 = vmatpush1.bf16.msra.mxu1 %v3108_v50 }
 0x421   : > { %3111 = vmatprep.subr.bf16.mxu1 %v3110_v36 }
 0x424   : > { %3113 = vmatpush1.bf16.msra.mxu1 %v3112_v55 }
 0x425   : > { %3115 = vmatprep.subr.bf16.mxu1 %v3114_v44 }
 0x427   : > { %2214 = vmatmul.mubr.f32.vlgmr.msra.gmra.mrb[72].mxu1 %v5357_v13  ;;  %v583_v13 = vld [vmem:[%s5682_s5 + $0x8] sm:$0xff] }
 0x428   : > { %3117 = vmatpush1.bf16.msra.mxu1 %v3116_v24  ;;  %2219 = vmatprep.mubr.f32.mxu1 %v5384_v9  ;;  %v586_v9 = vld [vmem:[%s5682_s5 + $0x20] sm:$0xff] }
 0x429   : > { %2230 = vmatprep.subr.mxu1 %v2141_v1  ;;  %v3154_v63 = vpack.c.bf16 %v586_v9, %v583_v13 }
 0x42b   : > { %2220 = vmatmul.mubr.f32.gmra.mrb[74].mxu1 %v5417_v42  ;;  %v584_v42 = vld [vmem:[%s5682_s5 + $0x10] sm:$0xff] }
 0x42c   : > { %2231 = vmatpush1.msra.mxu1 %v2140_v39  ;;  %2290 = vmatprep.mubr.f32.mxu1 %v6360_v20 }
 0x42d   : > { %3155 = vmatprep.subr.bf16.mxu1 %v3154_v63 }
 0x42f   : > { %2800 = vmatmul.mubr.msk.f32.vlgmr.msra.gmra.mrb[72].mxu1 %vm1523_vm4, %v5432_v4  ;;  %v587_v4 = vld [vmem:[%s5682_s5 + $0x28] sm:$0xff] }
 0x430   : > { %2296 = vmatprep.mubr.f32.mxu1 %v6360_v20  ;;  %v3158_v51 = vpack.c.bf16 %v587_v4, %v584_v42 }
 0x432   : > { %3160 = vmatprep.subr.msk.bf16.mxu0 %vm3159_vm0, %v3158_v51 }
 0x433   : > { %2801 = vmatmul.mubr.msk.f32.gmra.mrb[74].mxu1 %vm1523_vm4, %v5470_v25  ;;  %v585_v25 = vld [vmem:[%s5682_s5 + $0x18] sm:$0xff]  ;;  %3163 = vmatpush3.bf16.xpose.msk.msra.mxu0 %vm3159_vm0, %v3158_v51 }
 0x434   : > { %v3156_v58 = vpack.c.bf16 %v585_v25, %v582_v14 }
 0x436   : > { %3157 = vmatpush1.bf16.xpose.msra.mxu1 %v3156_v58 }
 0x4cd   : > { %v2888_v62 = vpop.f32.mrb[74].mxu0 }
 0x4ce   : > { %v2889_v5 = vpop.f32.mrb[75].mxu0 }
 0x4cf   : > { %v2890_v22 = vadd.f32 %v2889_v5, %v2888_v62 }
 0x4d1   : > { %v2891_v47 = vpop.f32.mrb[76].mxu0 }
 0x4d2   : > { %v2892_v45 = vpop.f32.mrb[77].mxu0 }
 0x4d3   : > { %v2893_v11 = vadd.f32 %v2892_v45, %v2891_v47 }
 0x4d5   : > { %v3027_v8 = vpop.f32.mrb[78].mxu0 }
 0x4d6   : > { %v2450_v16 = vadd.f32 %v3027_v8, %v2893_v11  ;;  %v2444_v48 = vpop.f32.mrb[79].mxu0 }
 0x4d7   : > { %v2445_v29 = vadd.f32 %v2890_v22, %v2444_v48 }
 0x4d9   : > { %3032 = vmatprep.mubr.msk.f32.mxu0 %vm1523_vm4, %v2445_v29 }
 0x4da   : > { %3033 = vmatmul.mubr.msk.f32.vlgmr.msra.gmra.mrb[80].mxu0 %vm1523_vm4, %v2450_v16  ;;  %vm6362_vm4 = vmmov %vm6361_vm2 }
 0x502   : > { %v2292_v31 = vpop.f32.mrb[72].mxu1 }
 0x503   : > { %v2294_v38 = vpop.f32.mrb[73].mxu1 }
 0x504   : > { %2529 = vmatprep.mubr.f32.mxu1 %v2294_v38 }
 0x505   : > { %2530 = vmatmul.mubr.f32.vlgmr.msra.gmra.mrb[76].mxu1 %v2292_v31 }
 0x506   : > { %v2298_v53 = vpop.f32.mrb[74].mxu1 }
 0x507   : > { %v2300_v54 = vpop.f32.mrb[75].mxu1 }
 0x508   : > { %2534 = vmatprep.mubr.f32.mxu1 %v2300_v54 }
 0x509   : > { %2535 = vmatmul.mubr.f32.gmra.mrb[78].mxu1 %v2298_v53 }
 0x5ad   : > { %v3034_v17 = vpop.f32.mrb[80].mxu0 }
 0x5ae   : > { %v2606_v34 = vpop.f32.mrb[81].mxu0 }
 0x5d8   : > { %v2531_v49 = vpop.f32.mrb[76].mxu1 }
 0x5d9   : > { %v2533_v2 = vpop.f32.mrb[77].mxu1  ;;  %v2607_v46 = vadd.f32 %v2606_v34, %v2531_v49 }
 0x5db   : > { %2615 = vst.msk [vmem:[%s346_s15] sm:$0xff] %vm6361_vm2, %v2607_v46 }
 0x5dc   : > { %v2536_v35 = vpop.f32.mrb[78].mxu1 }
 0x5dd   : > { %v2612_v37 = vadd.f32 %v3034_v17, %v2536_v35  ;;  %v2538_v23 = vpop.f32.mrb[79].mxu1 }
 0x5df   : > { %2616 = vst.msk [vmem:[%s346_s15 + $0x8] sm:$0xff] %vm6362_vm4, %v2612_v37 }
 0x5e0   : > { %3261 = shalt.err (!%p3258_p3)
}
 0x5e1   : > { %s3262_s17 = scalar_lea.hbm %s5632_s24, 256  ;;  %s3266_s16 = scalar_lea.hbm %s5684_s7, 512 }
 0x5e2   : > { %p3263_p4 = scmp.ne.s32.totalorder %s5632_s24, %s3262_s17  ;;  %p3267_p9 = scmp.lt.u32.totalorder %s5632_s24, %s5684_s7 }
 0x5e3   : > { %p3268_p5 = scmp.lt.u32.totalorder %s3266_s16, %s3262_s17  ;;  %p3270_p12 = scmp.lt.u32.totalorder %s3262_s17, %s5632_s24 }
 0x5e4   : > { %p3264_p7 = pnand %p3263_p4, %p6363_p11 }
 0x5e5   : > { %p3269_p10 = por %p3268_p5, %p3267_p9 }
 0x5e6   : > { %p3265_p8 = pneg %p3264_p7 }
 0x5e7   : > { %p3271_p13 = por %p3270_p12, %p3269_p10 }
 0x5e9   : > { %p3272_p0 = pnand %p3271_p13, %p3265_p8 }
 0x5eb   : > { %3275 = shalt.err (!%p3272_p0)
}
 0x5ec   : > { %s3321_s22 = smov 128   ;;  %s3322_s23 = smov 8  }
 0x5ed   : > { %3180 = dma.vmem_to_hbm [thread:$0]  (%p6363_p11), %s5627_s20, 256, %s5632_s24, %s2618_s25, %s3321_s22, %s3321_s22, %s3322_s23  }
 0x5ee PF: > { %s2646_s30 = sand.u32 1, %s3302_s26   ;;  %p6364_p1 = scmp.ne.s32.totalorder %s5947_s14, 0 }
 0x5ef   : > { %s2647_s1 = scalar_lea.sflag [#allocation4], %s2646_s30 }
 0x5f0   : > { %p3187_p2 = pnand %p2714_p6, %p6364_p1 }
 0x5f2   : > { %3297 = dma.done.wait (!%p3187_p2), %s2647_s1, 256  }
 0x5f3   : > { %3299 = vsyncadd (!%p3187_p2), %s2647_s1, 4294967040  ;;  %p19_p3 = scmp.ge.s32.totalorder %s3391_s8, 4   ;;  %s6365_s26 = smov %s3306_s27 }
 0x5f4   : > { %s6366_s27 = smov %s3310_s28  ;;  %s6367_s28 = smov %s3403_s11 }
 0x5f5   : > { %s6368_s29 = smov %s3391_s8  ;;  %21 = sbr.rel (!%p19_p3) target bundleno = 6 (0x6), region = 133 }
 0x5fc   :  { %2652 = vsyncpa [#allocation4], 1 }
 0x5fd   :  { %2654 = vsyncpa [#allocation4 + $0x1], 1 }
 0x5fe   :  { %2655 = vsyncpa [#allocation5], 1 }
 0x5ff   :  { %2657 = vsyncpa [#allocation5 + $0x1], 1 }

</bundles_post_ra>
